<compile_context>
chip_gen: v5e
topology: v5e:2x2
jax: 0.10.0
libtpu: 0.0.40
codegen_flags: <defaults>
</compile_context>

<pallas_src>
import functools
import math

import jax
import jax.numpy as jnp
from jax import lax
from jax.experimental import pallas as pl
from jax.experimental.pallas import tpu as pltpu

_VMEM_LIMIT = 32 * 1024 * 1024  # within default scoped VMEM on v5e/v6e/v7x


def _pick_time_block(seq_len, cap=16):
    """Largest divisor of seq_len <= cap (bounds the unrolled inner loop)."""
    for d in range(min(seq_len, cap), 0, -1):
        if seq_len % d == 0:
            return d
    return 1


def _pick_row_block(rows, cap=512):
    """Row tile for the hoisted input projection (multiple of 8 or full array)."""
    if rows <= cap:
        return rows
    for d in range(cap, 0, -1):
        if rows % d == 0 and d % 8 == 0:
            return d
    return rows


# ----------------------------------------------------------------------------
# Pallas kernels
# ----------------------------------------------------------------------------
def input_proj_kernel(x_ref, wih_ref, b_ref, ig_ref):
    """ig = x @ W_ih^T + (b_ih + b_hh) for a block of flattened (seq*batch) rows.

    x_ref:   (R, D)    layer input rows
    wih_ref: (D, 4H)   input->gates weight (pre-transposed)
    b_ref:   (1, 4H)   combined bias
    ig_ref:  (R, 4H)   input contribution to the gate pre-activations
    """
    ig_ref[...] = (
        jnp.dot(x_ref[...], wih_ref[...], preferred_element_type=jnp.float32)
        + b_ref[...]
    )


def lstm_block_kernel(ig_ref, whh_ref, wfc_ref, bfc_ref, hseq_ref, fc_ref,
                      h_scr, c_scr, *, t_blk, hidden):
    """T_BLK LSTM time steps per grid iteration (+ fused FC on the last step).

    ig_ref:   (T_BLK, B, 4H)  precomputed x@W_ih^T + bias for this time block
    whh_ref:  (H, 4H)         hidden->gates weight (pre-transposed)
    wfc_ref:  (H, C)          fc weight (pre-transposed)
    bfc_ref:  (1, C)          fc bias
    hseq_ref: (T_BLK, B, H)   hidden states for this block (next layer's input)
    fc_ref:   (B, C)          fc(final hidden) of this layer (written at last step)
    h_scr, c_scr: (B, H)      carried LSTM state in VMEM scratch
    """
    t = pl.program_id(0)

    @pl.when(t == 0)
    def _init():
        h_scr[...] = jnp.zeros_like(h_scr)
        c_scr[...] = jnp.zeros_like(c_scr)

    h = h_scr[...]
    c = c_scr[...]
    whh = whh_ref[...]
    H = hidden

    hs = []
    for i in range(t_blk):  # static unroll: only h@W_hh on the recurrent critical path
        gates = ig_ref[i] + jnp.dot(h, whh, preferred_element_type=jnp.float32)
        sg = jax.nn.sigmoid(gates)  # nonlinearity on the full (B, 4H) vreg (EUP)
        tg = jnp.tanh(gates)
        i_g = sg[:, 0 * H:1 * H]    # split only when forming c/h (PyTorch order i,f,g,o)
        f_g = sg[:, 1 * H:2 * H]
        g_g = tg[:, 2 * H:3 * H]
        o_g = sg[:, 3 * H:4 * H]
        c = f_g * c + i_g * g_g
        h = o_g * jnp.tanh(c)
        hs.append(h)

    hseq_ref[...] = jnp.stack(hs, axis=0)  # single batched store per grid step
    h_scr[...] = h                         # carry written once per block
    c_scr[...] = c

    @pl.when(t == pl.num_programs(0) - 1)
    def _fused_fc():
        fc_ref[...] = (
            jnp.dot(h, wfc_ref[...], preferred_element_type=jnp.float32)
            + bfc_ref[...]
        )


# ----------------------------------------------------------------------------
# Wrappers
# ----------------------------------------------------------------------------
def lstm_layer_pallas(x_tm, w_ih_t, w_hh_t, bias, w_fc_t, b_fc_row):
    """One LSTM layer over the full sequence + fused fc(final hidden).

    x_tm:   (S, B, D) time-major layer input
    w_ih_t: (D, 4H), w_hh_t: (H, 4H), bias: (1, 4H)
    w_fc_t: (H, C),  b_fc_row: (1, C)
    Returns (h_seq (S, B, H), fc_out (B, C)).
    """
    S, B, D = x_tm.shape
    H = w_hh_t.shape[0]
    G = 4 * H
    C = w_fc_t.shape[1]

    # --- hoisted input projection: one large MXU matmul over all time steps ---
    rows = S * B
    r_blk = _pick_row_block(rows)
    ig_flat = pl.pallas_call(
        input_proj_kernel,
        out_shape=jax.ShapeDtypeStruct((rows, G), jnp.float32),
        grid_spec=pltpu.PrefetchScalarGridSpec(
            num_scalar_prefetch=0,
            grid=(rows // r_blk,),
            in_specs=[
                pl.BlockSpec((r_blk, D), lambda r: (r, 0)),
                pl.BlockSpec((D, G), lambda r: (0, 0)),
                pl.BlockSpec((1, G), lambda r: (0, 0)),
            ],
            out_specs=pl.BlockSpec((r_blk, G), lambda r: (r, 0)),
        ),
        compiler_params=pltpu.CompilerParams(
            dimension_semantics=("parallel",),
            vmem_limit_bytes=_VMEM_LIMIT,
        ),
    )(x_tm.reshape(rows, D), w_ih_t, bias)
    ig = ig_flat.reshape(S, B, G)

    # --- recurrence: only h @ W_hh + elementwise inside the time loop ---------
    t_blk = _pick_time_block(S)
    kernel = functools.partial(lstm_block_kernel, t_blk=t_blk, hidden=H)
    h_seq, fc_out = pl.pallas_call(
        kernel,
        out_shape=(
            jax.ShapeDtypeStruct((S, B, H), jnp.float32),
            jax.ShapeDtypeStruct((B, C), jnp.float32),
        ),
        grid_spec=pltpu.PrefetchScalarGridSpec(
            num_scalar_prefetch=0,
            grid=(S // t_blk,),
            in_specs=[
                pl.BlockSpec((t_blk, B, G), lambda t: (t, 0, 0)),
                pl.BlockSpec((H, G), lambda t: (0, 0)),
                pl.BlockSpec((H, C), lambda t: (0, 0)),
                pl.BlockSpec((1, C), lambda t: (0, 0)),
            ],
            out_specs=[
                pl.BlockSpec((t_blk, B, H), lambda t: (t, 0, 0)),
                pl.BlockSpec((B, C), lambda t: (0, 0)),
            ],
            scratch_shapes=[
                pltpu.VMEM((B, H), jnp.float32),
                pltpu.VMEM((B, H), jnp.float32),
            ],
        ),
        compiler_params=pltpu.CompilerParams(
            dimension_semantics=("arbitrary",),  # sequential recurrence over time
            vmem_limit_bytes=_VMEM_LIMIT,
        ),
    )(ig, w_hh_t, w_fc_t, b_fc_row)
    return h_seq, fc_out


def init_params(key, num_classes, input_size, hidden_size, num_layers):
    """Deterministic init mimicking PyTorch's uniform(-1/sqrt(H), 1/sqrt(H))."""
    k = 1.0 / math.sqrt(hidden_size)
    params = {"lstm": [], "fc": None}
    for layer in range(num_layers):
        in_dim = input_size if layer == 0 else hidden_size
        key, k1, k2, k3, k4 = jax.random.split(key, 5)
        w_ih = jax.random.uniform(k1, (4 * hidden_size, in_dim), jnp.float32, -k, k)
        w_hh = jax.random.uniform(k2, (4 * hidden_size, hidden_size), jnp.float32, -k, k)
        b_ih = jax.random.uniform(k3, (4 * hidden_size,), jnp.float32, -k, k)
        b_hh = jax.random.uniform(k4, (4 * hidden_size,), jnp.float32, -k, k)
        params["lstm"].append((w_ih, w_hh, b_ih, b_hh))
    key, k1, k2 = jax.random.split(key, 3)
    kf = 1.0 / math.sqrt(hidden_size)
    w_fc = jax.random.uniform(k1, (num_classes, hidden_size), jnp.float32, -kf, kf)
    b_fc = jax.random.uniform(k2, (num_classes,), jnp.float32, -kf, kf)
    params["fc"] = (w_fc, b_fc)
    return params


@functools.partial(jax.jit, static_argnames=("num_layers", "hidden_size"))
def single_lstm_forward(x, params_flat, num_layers, hidden_size):
    """x: (B, S, input_size) -> (num_layers * B, num_classes)."""
    del hidden_size  # shapes carry H
    lstm_params = params_flat[:num_layers]
    w_fc, b_fc = params_flat[num_layers]
    w_fc_t = jnp.transpose(w_fc)            # (H, C)
    b_fc_row = b_fc.reshape(1, -1)          # (1, C)

    x_tm = jnp.transpose(x, (1, 0, 2)).astype(jnp.float32)  # (S, B, D) time-major

    outs = []
    layer_in = x_tm
    for layer in range(num_layers):
        w_ih, w_hh, b_ih, b_hh = lstm_params[layer]
        w_ih_t = jnp.transpose(w_ih)                    # (D, 4H)
        w_hh_t = jnp.transpose(w_hh)                    # (H, 4H)
        bias = (b_ih + b_hh).reshape(1, -1)             # (1, 4H)
        h_seq, fc_layer = lstm_layer_pallas(
            layer_in, w_ih_t, w_hh_t, bias, w_fc_t, b_fc_row)
        outs.append(fc_layer)                           # fc of this layer's final hidden
        layer_in = h_seq                                # next layer input (no dropout: eval)

    # Matches PyTorch h_out.view(-1, hidden) row order: layer-major, then batch.
    return jnp.concatenate(outs, axis=0)                # (num_layers*B, C)


# ----------------------------------------------------------------------------
# Pure-JAX reference (for correctness check)
# ----------------------------------------------------------------------------
def reference_forward(x, params, num_layers, hidden_size):
    B = x.shape[0]
    x_tm = jnp.transpose(x, (1, 0, 2))
    h_lasts = []
    layer_in = x_tm
    for layer in range(num_layers):
        w_ih, w_hh, b_ih, b_hh = params["lstm"][layer]

        def step(carry, x_t, w_ih=w_ih, w_hh=w_hh, b_ih=b_ih, b_hh=b_hh):
            h, c = carry
            gates = x_t @ w_ih.T + b_ih + h @ w_hh.T + b_hh
            i, f, g, o = jnp.split(gates, 4, axis=-1)
            i, f, o = jax.nn.sigmoid(i), jax.nn.sigmoid(f), jax.nn.sigmoid(o)
            g = jnp.tanh(g)
            c = f * c + i * g
            h = o * jnp.tanh(c)
            return (h, c), h

        init = (jnp.zeros((B, hidden_size)), jnp.zeros((B, hidden_size)))
        (h_last, _), h_seq = lax.scan(step, init, layer_in)
        h_lasts.append(h_last)
        layer_in = h_seq
    h_out = jnp.stack(h_lasts, axis=0).reshape(-1, hidden_size)
    w_fc, b_fc = params["fc"]
    return h_out @ w_fc.T + b_fc


# ----------------------------------------------------------------------------
if __name__ == "__main__":
    num_classes = 4
    input_size = 16
    hidden_size = 32
    num_layers = 2
    batch = 2
    seq = 8

    key = jax.random.PRNGKey(0)
    key, kx = jax.random.split(key)
    x = jax.random.normal(kx, (batch, seq, input_size), jnp.float32)

    params = init_params(key, num_classes, input_size, hidden_size, num_layers)
    params_flat = tuple(params["lstm"]) + (params["fc"],)

    out = single_lstm_forward(
        x, params_flat, num_layers=num_layers, hidden_size=hidden_size)
    out = jax.block_until_ready(out)

    ref = reference_forward(x, params, num_layers, hidden_size)
    assert out.shape == (num_layers * batch, num_classes), out.shape
    assert jnp.allclose(out, ref, atol=1e-5, rtol=1e-5), (
        f"max abs err {jnp.max(jnp.abs(out - ref))}"
    )

    print("KERNEL_OK")
</pallas_src>

<mosaic_0001>
module attributes {stable_mosaic.version = 11 : i64} {
  func.func @input_proj_kernel(%arg0: i32, %arg1: memref<16x16xf32, #tpu.memory_space<vmem>>, %arg2: memref<16x128xf32, #tpu.memory_space<vmem>>, %arg3: memref<1x128xf32, #tpu.memory_space<vmem>>, %arg4: memref<16x128xf32, #tpu.memory_space<vmem>>) attributes {dimension_semantics = [#tpu.dimension_semantics<parallel>], iteration_bounds = array<i64: 1>, scalar_prefetch = 0 : i64, scratch_operands = 0 : i64, tpu.core_type = #tpu.core_type<tc>, window_params = [{transform_indices = @transform_0, window_bounds = array<i64: 16, 16>}, {pipeline_mode = #tpu.pipeline_mode<synchronous>, transform_indices = @transform_1, window_bounds = array<i64: 16, 128>}, {pipeline_mode = #tpu.pipeline_mode<synchronous>, transform_indices = @transform_2, window_bounds = array<i64: 1, 128>}, {transform_indices = @transform_3, window_bounds = array<i64: 16, 128>}]} {
    %c0 = arith.constant 0 : index
    %c0_0 = arith.constant 0 : index
    %0 = vector.load %arg1[%c0, %c0_0] : memref<16x16xf32, #tpu.memory_space<vmem>>, vector<16x16xf32>
    %c0_1 = arith.constant 0 : index
    %c0_2 = arith.constant 0 : index
    %1 = vector.load %arg2[%c0_1, %c0_2] : memref<16x128xf32, #tpu.memory_space<vmem>>, vector<16x128xf32>
    %cst = arith.constant dense<0.000000e+00> : vector<16x128xf32>
    %2 = tpu.matmul %0, %1, %cst {dimension_numbers = #tpu.dot_dimension_numbers<[1], [0], [0], [1], [0, 0, 1, 1], [], []>} : vector<16x16xf32>, vector<16x128xf32>, vector<16x128xf32> -> vector<16x128xf32>
    %c0_3 = arith.constant 0 : index
    %c0_4 = arith.constant 0 : index
    %3 = vector.load %arg3[%c0_3, %c0_4] : memref<1x128xf32, #tpu.memory_space<vmem>>, vector<1x128xf32>
    %4 = vector.broadcast %3 : vector<1x128xf32> to vector<16x128xf32>
    %5 = arith.addf %2, %4 : vector<16x128xf32>
    %c0_5 = arith.constant 0 : index
    %c0_6 = arith.constant 0 : index
    %6 = vector.load %arg4[%c0_5, %c0_6] : memref<16x128xf32, #tpu.memory_space<vmem>>, vector<16x128xf32>
    tpu.vector_store %arg4[%c0_5, %c0_6], %5 {strides = array<i32>} : memref<16x128xf32, #tpu.memory_space<vmem>>, vector<16x128xf32>,
    return
  }
  func.func @transform_0(%arg0: i32) -> (i32, i32) {
    %c0_i32 = arith.constant 0 : i32
    %c0_i32_0 = arith.constant 0 : i32
    return %arg0, %c0_i32 : i32, i32
  }
  func.func @transform_1(%arg0: i32) -> (i32, i32) {
    %c0_i32 = arith.constant 0 : i32
    %c0_i32_0 = arith.constant 0 : i32
    %c0_i32_1 = arith.constant 0 : i32
    return %c0_i32, %c0_i32_0 : i32, i32
  }
  func.func @transform_2(%arg0: i32) -> (i32, i32) {
    %c0_i32 = arith.constant 0 : i32
    %c0_i32_0 = arith.constant 0 : i32
    %c0_i32_1 = arith.constant 0 : i32
    return %c0_i32, %c0_i32_0 : i32, i32
  }
  func.func @transform_3(%arg0: i32) -> (i32, i32) {
    %c0_i32 = arith.constant 0 : i32
    %c0_i32_0 = arith.constant 0 : i32
    return %arg0, %c0_i32 : i32, i32
  }
}

module attributes {stable_mosaic.version = 11 : i64} {
  func.func @input_proj_kernel(%arg0: i32, %arg1: memref<16x32xf32, #tpu.memory_space<vmem>>, %arg2: memref<32x128xf32, #tpu.memory_space<vmem>>, %arg3: memref<1x128xf32, #tpu.memory_space<vmem>>, %arg4: memref<16x128xf32, #tpu.memory_space<vmem>>) attributes {dimension_semantics = [#tpu.dimension_semantics<parallel>], iteration_bounds = array<i64: 1>, scalar_prefetch = 0 : i64, scratch_operands = 0 : i64, tpu.core_type = #tpu.core_type<tc>, window_params = [{transform_indices = @transform_0, window_bounds = array<i64: 16, 32>}, {pipeline_mode = #tpu.pipeline_mode<synchronous>, transform_indices = @transform_1, window_bounds = array<i64: 32, 128>}, {pipeline_mode = #tpu.pipeline_mode<synchronous>, transform_indices = @transform_2, window_bounds = array<i64: 1, 128>}, {transform_indices = @transform_3, window_bounds = array<i64: 16, 128>}]} {
    %c0 = arith.constant 0 : index
    %c0_0 = arith.constant 0 : index
    %0 = vector.load %arg1[%c0, %c0_0] : memref<16x32xf32, #tpu.memory_space<vmem>>, vector<16x32xf32>
    %c0_1 = arith.constant 0 : index
    %c0_2 = arith.constant 0 : index
    %1 = vector.load %arg2[%c0_1, %c0_2] : memref<32x128xf32, #tpu.memory_space<vmem>>, vector<32x128xf32>
    %cst = arith.constant dense<0.000000e+00> : vector<16x128xf32>
    %2 = tpu.matmul %0, %1, %cst {dimension_numbers = #tpu.dot_dimension_numbers<[1], [0], [0], [1], [0, 0, 1, 1], [], []>} : vector<16x32xf32>, vector<32x128xf32>, vector<16x128xf32> -> vector<16x128xf32>
    %c0_3 = arith.constant 0 : index
    %c0_4 = arith.constant 0 : index
    %3 = vector.load %arg3[%c0_3, %c0_4] : memref<1x128xf32, #tpu.memory_space<vmem>>, vector<1x128xf32>
    %4 = vector.broadcast %3 : vector<1x128xf32> to vector<16x128xf32>
    %5 = arith.addf %2, %4 : vector<16x128xf32>
    %c0_5 = arith.constant 0 : index
    %c0_6 = arith.constant 0 : index
    %6 = vector.load %arg4[%c0_5, %c0_6] : memref<16x128xf32, #tpu.memory_space<vmem>>, vector<16x128xf32>
    tpu.vector_store %arg4[%c0_5, %c0_6], %5 {strides = array<i32>} : memref<16x128xf32, #tpu.memory_space<vmem>>, vector<16x128xf32>,
    return
  }
  func.func @transform_0(%arg0: i32) -> (i32, i32) {
    %c0_i32 = arith.constant 0 : i32
    %c0_i32_0 = arith.constant 0 : i32
    return %arg0, %c0_i32 : i32, i32
  }
  func.func @transform_1(%arg0: i32) -> (i32, i32) {
    %c0_i32 = arith.constant 0 : i32
    %c0_i32_0 = arith.constant 0 : i32
    %c0_i32_1 = arith.constant 0 : i32
    return %c0_i32, %c0_i32_0 : i32, i32
  }
  func.func @transform_2(%arg0: i32) -> (i32, i32) {
    %c0_i32 = arith.constant 0 : i32
    %c0_i32_0 = arith.constant 0 : i32
    %c0_i32_1 = arith.constant 0 : i32
    return %c0_i32, %c0_i32_0 : i32, i32
  }
  func.func @transform_3(%arg0: i32) -> (i32, i32) {
    %c0_i32 = arith.constant 0 : i32
    %c0_i32_0 = arith.constant 0 : i32
    return %arg0, %c0_i32 : i32, i32
  }
}

module attributes {stable_mosaic.version = 11 : i64} {
  func.func @lstm_block_kernel(%arg0: i32, %arg1: memref<8x2x128xf32, #tpu.memory_space<vmem>>, %arg2: memref<32x128xf32, #tpu.memory_space<vmem>>, %arg3: memref<32x4xf32, #tpu.memory_space<vmem>>, %arg4: memref<1x4xf32, #tpu.memory_space<vmem>>, %arg5: memref<8x2x32xf32, #tpu.memory_space<vmem>>, %arg6: memref<2x4xf32, #tpu.memory_space<vmem>>, %arg7: memref<2x32xf32, #tpu.memory_space<vmem>>, %arg8: memref<2x32xf32, #tpu.memory_space<vmem>>) attributes {dimension_semantics = [#tpu.dimension_semantics<arbitrary>], iteration_bounds = array<i64: 1>, scalar_prefetch = 0 : i64, scratch_operands = 2 : i64, tpu.core_type = #tpu.core_type<tc>, window_params = [{transform_indices = @transform_0, window_bounds = array<i64: 8, 2, 128>}, {pipeline_mode = #tpu.pipeline_mode<synchronous>, transform_indices = @transform_1, window_bounds = array<i64: 32, 128>}, {pipeline_mode = #tpu.pipeline_mode<synchronous>, transform_indices = @transform_2, window_bounds = array<i64: 32, 4>}, {pipeline_mode = #tpu.pipeline_mode<synchronous>, transform_indices = @transform_3, window_bounds = array<i64: 1, 4>}, {transform_indices = @transform_4, window_bounds = array<i64: 8, 2, 32>}, {pipeline_mode = #tpu.pipeline_mode<synchronous>, transform_indices = @transform_5, window_bounds = array<i64: 2, 4>}]} {
    %c0_i32 = arith.constant 0 : i32
    %0 = arith.cmpi eq, %arg0, %c0_i32 : i32
    %1 = arith.extui %0 : i1 to i32
    %c0_i32_0 = arith.constant 0 : i32
    %2 = arith.cmpi ne, %1, %c0_i32_0 : i32
    scf.if %2 {
      %cst_47 = arith.constant 0.000000e+00 : f32
      %173 = vector.broadcast %cst_47 : f32 to vector<2x32xf32>
      %c0_48 = arith.constant 0 : index
      %c0_49 = arith.constant 0 : index
      %174 = vector.load %arg7[%c0_48, %c0_49] : memref<2x32xf32, #tpu.memory_space<vmem>>, vector<2x32xf32>
      tpu.vector_store %arg7[%c0_48, %c0_49], %173 {strides = array<i32>} : memref<2x32xf32, #tpu.memory_space<vmem>>, vector<2x32xf32>,
      %cst_50 = arith.constant 0.000000e+00 : f32
      %175 = vector.broadcast %cst_50 : f32 to vector<2x32xf32>
      %c0_51 = arith.constant 0 : index
      %c0_52 = arith.constant 0 : index
      %176 = vector.load %arg8[%c0_51, %c0_52] : memref<2x32xf32, #tpu.memory_space<vmem>>, vector<2x32xf32>
      tpu.vector_store %arg8[%c0_51, %c0_52], %175 {strides = array<i32>} : memref<2x32xf32, #tpu.memory_space<vmem>>, vector<2x32xf32>,
    } else {
    }
    %c0 = arith.constant 0 : index
    %c0_1 = arith.constant 0 : index
    %3 = vector.load %arg7[%c0, %c0_1] : memref<2x32xf32, #tpu.memory_space<vmem>>, vector<2x32xf32>
    %c0_2 = arith.constant 0 : index
    %c0_3 = arith.constant 0 : index
    %4 = vector.load %arg8[%c0_2, %c0_3] : memref<2x32xf32, #tpu.memory_space<vmem>>, vector<2x32xf32>
    %c0_4 = arith.constant 0 : index
    %c0_5 = arith.constant 0 : index
    %5 = vector.load %arg2[%c0_4, %c0_5] : memref<32x128xf32, #tpu.memory_space<vmem>>, vector<32x128xf32>
    %c0_6 = arith.constant 0 : index
    %c0_7 = arith.constant 0 : index
    %c0_8 = arith.constant 0 : index
    %6 = vector.load %arg1[%c0_6, %c0_7, %c0_8] : memref<8x2x128xf32, #tpu.memory_space<vmem>>, vector<1x2x128xf32>
    %7 = vector.shape_cast %6 : vector<1x2x128xf32> to vector<2x128xf32>
    %cst = arith.constant dense<0.000000e+00> : vector<2x128xf32>
    %8 = tpu.matmul %3, %5, %cst {dimension_numbers = #tpu.dot_dimension_numbers<[1], [0], [0], [1], [0, 0, 1, 1], [], []>} : vector<2x32xf32>, vector<32x128xf32>, vector<2x128xf32> -> vector<2x128xf32>
    %9 = arith.addf %7, %8 : vector<2x128xf32>
    %10 = arith.negf %9 : vector<2x128xf32>
    %11 = math.exp %10 : vector<2x128xf32>
    %cst_9 = arith.constant 1.000000e+00 : f32
    %12 = vector.broadcast %cst_9 : f32 to vector<2x128xf32>
    %13 = arith.addf %12, %11 : vector<2x128xf32>
    %14 = arith.divf %12, %13 : vector<2x128xf32>
    %15 = math.tanh %9 : vector<2x128xf32>
    %16 = vector.extract_strided_slice %14 {offsets = [0, 0], sizes = [2, 32], strides = [1, 1]} : vector<2x128xf32> to vector<2x32xf32>
    %17 = vector.extract_strided_slice %14 {offsets = [0, 32], sizes = [2, 32], strides = [1, 1]} : vector<2x128xf32> to vector<2x32xf32>
    %18 = vector.extract_strided_slice %15 {offsets = [0, 64], sizes = [2, 32], strides = [1, 1]} : vector<2x128xf32> to vector<2x32xf32>
    %19 = vector.extract_strided_slice %14 {offsets = [0, 96], sizes = [2, 32], strides = [1, 1]} : vector<2x128xf32> to vector<2x32xf32>
    %20 = arith.mulf %17, %4 : vector<2x32xf32>
    %21 = arith.mulf %16, %18 : vector<2x32xf32>
    %22 = arith.addf %20, %21 : vector<2x32xf32>
    %23 = math.tanh %22 : vector<2x32xf32>
    %24 = arith.mulf %19, %23 : vector<2x32xf32>
    %c1 = arith.constant 1 : index
    %c0_10 = arith.constant 0 : index
    %c0_11 = arith.constant 0 : index
    %25 = vector.load %arg1[%c1, %c0_10, %c0_11] : memref<8x2x128xf32, #tpu.memory_space<vmem>>, vector<1x2x128xf32>
    %26 = vector.shape_cast %25 : vector<1x2x128xf32> to vector<2x128xf32>
    %cst_12 = arith.constant dense<0.000000e+00> : vector<2x128xf32>
    %27 = tpu.matmul %24, %5, %cst_12 {dimension_numbers = #tpu.dot_dimension_numbers<[1], [0], [0], [1], [0, 0, 1, 1], [], []>} : vector<2x32xf32>, vector<32x128xf32>, vector<2x128xf32> -> vector<2x128xf32>
    %28 = arith.addf %26, %27 : vector<2x128xf32>
    %29 = arith.negf %28 : vector<2x128xf32>
    %30 = math.exp %29 : vector<2x128xf32>
    %cst_13 = arith.constant 1.000000e+00 : f32
    %31 = vector.broadcast %cst_13 : f32 to vector<2x128xf32>
    %32 = arith.addf %31, %30 : vector<2x128xf32>
    %33 = arith.divf %31, %32 : vector<2x128xf32>
    %34 = math.tanh %28 : vector<2x128xf32>
    %35 = vector.extract_strided_slice %33 {offsets = [0, 0], sizes = [2, 32], strides = [1, 1]} : vector<2x128xf32> to vector<2x32xf32>
    %36 = vector.extract_strided_slice %33 {offsets = [0, 32], sizes = [2, 32], strides = [1, 1]} : vector<2x128xf32> to vector<2x32xf32>
    %37 = vector.extract_strided_slice %34 {offsets = [0, 64], sizes = [2, 32], strides = [1, 1]} : vector<2x128xf32> to vector<2x32xf32>
    %38 = vector.extract_strided_slice %33 {offsets = [0, 96], sizes = [2, 32], strides = [1, 1]} : vector<2x128xf32> to vector<2x32xf32>
    %39 = arith.mulf %36, %22 : vector<2x32xf32>
    %40 = arith.mulf %35, %37 : vector<2x32xf32>
    %41 = arith.addf %39, %40 : vector<2x32xf32>
    %42 = math.tanh %41 : vector<2x32xf32>
    %43 = arith.mulf %38, %42 : vector<2x32xf32>
    %c2 = arith.constant 2 : index
    %c0_14 = arith.constant 0 : index
    %c0_15 = arith.constant 0 : index
    %44 = vector.load %arg1[%c2, %c0_14, %c0_15] : memref<8x2x128xf32, #tpu.memory_space<vmem>>, vector<1x2x128xf32>
    %45 = vector.shape_cast %44 : vector<1x2x128xf32> to vector<2x128xf32>
    %cst_16 = arith.constant dense<0.000000e+00> : vector<2x128xf32>
    %46 = tpu.matmul %43, %5, %cst_16 {dimension_numbers = #tpu.dot_dimension_numbers<[1], [0], [0], [1], [0, 0, 1, 1], [], []>} : vector<2x32xf32>, vector<32x128xf32>, vector<2x128xf32> -> vector<2x128xf32>
    %47 = arith.addf %45, %46 : vector<2x128xf32>
    %48 = arith.negf %47 : vector<2x128xf32>
    %49 = math.exp %48 : vector<2x128xf32>
    %cst_17 = arith.constant 1.000000e+00 : f32
    %50 = vector.broadcast %cst_17 : f32 to vector<2x128xf32>
    %51 = arith.addf %50, %49 : vector<2x128xf32>
    %52 = arith.divf %50, %51 : vector<2x128xf32>
    %53 = math.tanh %47 : vector<2x128xf32>
    %54 = vector.extract_strided_slice %52 {offsets = [0, 0], sizes = [2, 32], strides = [1, 1]} : vector<2x128xf32> to vector<2x32xf32>
    %55 = vector.extract_strided_slice %52 {offsets = [0, 32], sizes = [2, 32], strides = [1, 1]} : vector<2x128xf32> to vector<2x32xf32>
    %56 = vector.extract_strided_slice %53 {offsets = [0, 64], sizes = [2, 32], strides = [1, 1]} : vector<2x128xf32> to vector<2x32xf32>
    %57 = vector.extract_strided_slice %52 {offsets = [0, 96], sizes = [2, 32], strides = [1, 1]} : vector<2x128xf32> to vector<2x32xf32>
    %58 = arith.mulf %55, %41 : vector<2x32xf32>
    %59 = arith.mulf %54, %56 : vector<2x32xf32>
    %60 = arith.addf %58, %59 : vector<2x32xf32>
    %61 = math.tanh %60 : vector<2x32xf32>
    %62 = arith.mulf %57, %61 : vector<2x32xf32>
    %c3 = arith.constant 3 : index
    %c0_18 = arith.constant 0 : index
    %c0_19 = arith.constant 0 : index
    %63 = vector.load %arg1[%c3, %c0_18, %c0_19] : memref<8x2x128xf32, #tpu.memory_space<vmem>>, vector<1x2x128xf32>
    %64 = vector.shape_cast %63 : vector<1x2x128xf32> to vector<2x128xf32>
    %cst_20 = arith.constant dense<0.000000e+00> : vector<2x128xf32>
    %65 = tpu.matmul %62, %5, %cst_20 {dimension_numbers = #tpu.dot_dimension_numbers<[1], [0], [0], [1], [0, 0, 1, 1], [], []>} : vector<2x32xf32>, vector<32x128xf32>, vector<2x128xf32> -> vector<2x128xf32>
    %66 = arith.addf %64, %65 : vector<2x128xf32>
    %67 = arith.negf %66 : vector<2x128xf32>
    %68 = math.exp %67 : vector<2x128xf32>
    %cst_21 = arith.constant 1.000000e+00 : f32
    %69 = vector.broadcast %cst_21 : f32 to vector<2x128xf32>
    %70 = arith.addf %69, %68 : vector<2x128xf32>
    %71 = arith.divf %69, %70 : vector<2x128xf32>
    %72 = math.tanh %66 : vector<2x128xf32>
    %73 = vector.extract_strided_slice %71 {offsets = [0, 0], sizes = [2, 32], strides = [1, 1]} : vector<2x128xf32> to vector<2x32xf32>
    %74 = vector.extract_strided_slice %71 {offsets = [0, 32], sizes = [2, 32], strides = [1, 1]} : vector<2x128xf32> to vector<2x32xf32>
    %75 = vector.extract_strided_slice %72 {offsets = [0, 64], sizes = [2, 32], strides = [1, 1]} : vector<2x128xf32> to vector<2x32xf32>
    %76 = vector.extract_strided_slice %71 {offsets = [0, 96], sizes = [2, 32], strides = [1, 1]} : vector<2x128xf32> to vector<2x32xf32>
    %77 = arith.mulf %74, %60 : vector<2x32xf32>
    %78 = arith.mulf %73, %75 : vector<2x32xf32>
    %79 = arith.addf %77, %78 : vector<2x32xf32>
    %80 = math.tanh %79 : vector<2x32xf32>
    %81 = arith.mulf %76, %80 : vector<2x32xf32>
    %c4 = arith.constant 4 : index
    %c0_22 = arith.constant 0 : index
    %c0_23 = arith.constant 0 : index
    %82 = vector.load %arg1[%c4, %c0_22, %c0_23] : memref<8x2x128xf32, #tpu.memory_space<vmem>>, vector<1x2x128xf32>
    %83 = vector.shape_cast %82 : vector<1x2x128xf32> to vector<2x128xf32>
    %cst_24 = arith.constant dense<0.000000e+00> : vector<2x128xf32>
    %84 = tpu.matmul %81, %5, %cst_24 {dimension_numbers = #tpu.dot_dimension_numbers<[1], [0], [0], [1], [0, 0, 1, 1], [], []>} : vector<2x32xf32>, vector<32x128xf32>, vector<2x128xf32> -> vector<2x128xf32>
    %85 = arith.addf %83, %84 : vector<2x128xf32>
    %86 = arith.negf %85 : vector<2x128xf32>
    %87 = math.exp %86 : vector<2x128xf32>
    %cst_25 = arith.constant 1.000000e+00 : f32
    %88 = vector.broadcast %cst_25 : f32 to vector<2x128xf32>
    %89 = arith.addf %88, %87 : vector<2x128xf32>
    %90 = arith.divf %88, %89 : vector<2x128xf32>
    %91 = math.tanh %85 : vector<2x128xf32>
    %92 = vector.extract_strided_slice %90 {offsets = [0, 0], sizes = [2, 32], strides = [1, 1]} : vector<2x128xf32> to vector<2x32xf32>
    %93 = vector.extract_strided_slice %90 {offsets = [0, 32], sizes = [2, 32], strides = [1, 1]} : vector<2x128xf32> to vector<2x32xf32>
    %94 = vector.extract_strided_slice %91 {offsets = [0, 64], sizes = [2, 32], strides = [1, 1]} : vector<2x128xf32> to vector<2x32xf32>
    %95 = vector.extract_strided_slice %90 {offsets = [0, 96], sizes = [2, 32], strides = [1, 1]} : vector<2x128xf32> to vector<2x32xf32>
    %96 = arith.mulf %93, %79 : vector<2x32xf32>
    %97 = arith.mulf %92, %94 : vector<2x32xf32>
    %98 = arith.addf %96, %97 : vector<2x32xf32>
    %99 = math.tanh %98 : vector<2x32xf32>
    %100 = arith.mulf %95, %99 : vector<2x32xf32>
    %c5 = arith.constant 5 : index
    %c0_26 = arith.constant 0 : index
    %c0_27 = arith.constant 0 : index
    %101 = vector.load %arg1[%c5, %c0_26, %c0_27] : memref<8x2x128xf32, #tpu.memory_space<vmem>>, vector<1x2x128xf32>
    %102 = vector.shape_cast %101 : vector<1x2x128xf32> to vector<2x128xf32>
    %cst_28 = arith.constant dense<0.000000e+00> : vector<2x128xf32>
    %103 = tpu.matmul %100, %5, %cst_28 {dimension_numbers = #tpu.dot_dimension_numbers<[1], [0], [0], [1], [0, 0, 1, 1], [], []>} : vector<2x32xf32>, vector<32x128xf32>, vector<2x128xf32> -> vector<2x128xf32>
    %104 = arith.addf %102, %103 : vector<2x128xf32>
    %105 = arith.negf %104 : vector<2x128xf32>
    %106 = math.exp %105 : vector<2x128xf32>
    %cst_29 = arith.constant 1.000000e+00 : f32
    %107 = vector.broadcast %cst_29 : f32 to vector<2x128xf32>
    %108 = arith.addf %107, %106 : vector<2x128xf32>
    %109 = arith.divf %107, %108 : vector<2x128xf32>
    %110 = math.tanh %104 : vector<2x128xf32>
    %111 = vector.extract_strided_slice %109 {offsets = [0, 0], sizes = [2, 32], strides = [1, 1]} : vector<2x128xf32> to vector<2x32xf32>
    %112 = vector.extract_strided_slice %109 {offsets = [0, 32], sizes = [2, 32], strides = [1, 1]} : vector<2x128xf32> to vector<2x32xf32>
    %113 = vector.extract_strided_slice %110 {offsets = [0, 64], sizes = [2, 32], strides = [1, 1]} : vector<2x128xf32> to vector<2x32xf32>
    %114 = vector.extract_strided_slice %109 {offsets = [0, 96], sizes = [2, 32], strides = [1, 1]} : vector<2x128xf32> to vector<2x32xf32>
    %115 = arith.mulf %112, %98 : vector<2x32xf32>
    %116 = arith.mulf %111, %113 : vector<2x32xf32>
    %117 = arith.addf %115, %116 : vector<2x32xf32>
    %118 = math.tanh %117 : vector<2x32xf32>
    %119 = arith.mulf %114, %118 : vector<2x32xf32>
    %c6 = arith.constant 6 : index
    %c0_30 = arith.constant 0 : index
    %c0_31 = arith.constant 0 : index
    %120 = vector.load %arg1[%c6, %c0_30, %c0_31] : memref<8x2x128xf32, #tpu.memory_space<vmem>>, vector<1x2x128xf32>
    %121 = vector.shape_cast %120 : vector<1x2x128xf32> to vector<2x128xf32>
    %cst_32 = arith.constant dense<0.000000e+00> : vector<2x128xf32>
    %122 = tpu.matmul %119, %5, %cst_32 {dimension_numbers = #tpu.dot_dimension_numbers<[1], [0], [0], [1], [0, 0, 1, 1], [], []>} : vector<2x32xf32>, vector<32x128xf32>, vector<2x128xf32> -> vector<2x128xf32>
    %123 = arith.addf %121, %122 : vector<2x128xf32>
    %124 = arith.negf %123 : vector<2x128xf32>
    %125 = math.exp %124 : vector<2x128xf32>
    %cst_33 = arith.constant 1.000000e+00 : f32
    %126 = vector.broadcast %cst_33 : f32 to vector<2x128xf32>
    %127 = arith.addf %126, %125 : vector<2x128xf32>
    %128 = arith.divf %126, %127 : vector<2x128xf32>
    %129 = math.tanh %123 : vector<2x128xf32>
    %130 = vector.extract_strided_slice %128 {offsets = [0, 0], sizes = [2, 32], strides = [1, 1]} : vector<2x128xf32> to vector<2x32xf32>
    %131 = vector.extract_strided_slice %128 {offsets = [0, 32], sizes = [2, 32], strides = [1, 1]} : vector<2x128xf32> to vector<2x32xf32>
    %132 = vector.extract_strided_slice %129 {offsets = [0, 64], sizes = [2, 32], strides = [1, 1]} : vector<2x128xf32> to vector<2x32xf32>
    %133 = vector.extract_strided_slice %128 {offsets = [0, 96], sizes = [2, 32], strides = [1, 1]} : vector<2x128xf32> to vector<2x32xf32>
    %134 = arith.mulf %131, %117 : vector<2x32xf32>
    %135 = arith.mulf %130, %132 : vector<2x32xf32>
    %136 = arith.addf %134, %135 : vector<2x32xf32>
    %137 = math.tanh %136 : vector<2x32xf32>
    %138 = arith.mulf %133, %137 : vector<2x32xf32>
    %c7 = arith.constant 7 : index
    %c0_34 = arith.constant 0 : index
    %c0_35 = arith.constant 0 : index
    %139 = vector.load %arg1[%c7, %c0_34, %c0_35] : memref<8x2x128xf32, #tpu.memory_space<vmem>>, vector<1x2x128xf32>
    %140 = vector.shape_cast %139 : vector<1x2x128xf32> to vector<2x128xf32>
    %cst_36 = arith.constant dense<0.000000e+00> : vector<2x128xf32>
    %141 = tpu.matmul %138, %5, %cst_36 {dimension_numbers = #tpu.dot_dimension_numbers<[1], [0], [0], [1], [0, 0, 1, 1], [], []>} : vector<2x32xf32>, vector<32x128xf32>, vector<2x128xf32> -> vector<2x128xf32>
    %142 = arith.addf %140, %141 : vector<2x128xf32>
    %143 = arith.negf %142 : vector<2x128xf32>
    %144 = math.exp %143 : vector<2x128xf32>
    %cst_37 = arith.constant 1.000000e+00 : f32
    %145 = vector.broadcast %cst_37 : f32 to vector<2x128xf32>
    %146 = arith.addf %145, %144 : vector<2x128xf32>
    %147 = arith.divf %145, %146 : vector<2x128xf32>
    %148 = math.tanh %142 : vector<2x128xf32>
    %149 = vector.extract_strided_slice %147 {offsets = [0, 0], sizes = [2, 32], strides = [1, 1]} : vector<2x128xf32> to vector<2x32xf32>
    %150 = vector.extract_strided_slice %147 {offsets = [0, 32], sizes = [2, 32], strides = [1, 1]} : vector<2x128xf32> to vector<2x32xf32>
    %151 = vector.extract_strided_slice %148 {offsets = [0, 64], sizes = [2, 32], strides = [1, 1]} : vector<2x128xf32> to vector<2x32xf32>
    %152 = vector.extract_strided_slice %147 {offsets = [0, 96], sizes = [2, 32], strides = [1, 1]} : vector<2x128xf32> to vector<2x32xf32>
    %153 = arith.mulf %150, %136 : vector<2x32xf32>
    %154 = arith.mulf %149, %151 : vector<2x32xf32>
    %155 = arith.addf %153, %154 : vector<2x32xf32>
    %156 = math.tanh %155 : vector<2x32xf32>
    %157 = arith.mulf %152, %156 : vector<2x32xf32>
    %158 = vector.shape_cast %24 : vector<2x32xf32> to vector<1x2x32xf32>
    %159 = vector.shape_cast %43 : vector<2x32xf32> to vector<1x2x32xf32>
    %160 = vector.shape_cast %62 : vector<2x32xf32> to vector<1x2x32xf32>
    %161 = vector.shape_cast %81 : vector<2x32xf32> to vector<1x2x32xf32>
    %162 = vector.shape_cast %100 : vector<2x32xf32> to vector<1x2x32xf32>
    %163 = vector.shape_cast %119 : vector<2x32xf32> to vector<1x2x32xf32>
    %164 = vector.shape_cast %138 : vector<2x32xf32> to vector<1x2x32xf32>
    %165 = vector.shape_cast %157 : vector<2x32xf32> to vector<1x2x32xf32>
    %166 = tpu.concatenate %158, %159, %160, %161, %162, %163, %164, %165 in 0 : vector<1x2x32xf32>, vector<1x2x32xf32>, vector<1x2x32xf32>, vector<1x2x32xf32>, vector<1x2x32xf32>, vector<1x2x32xf32>, vector<1x2x32xf32>, vector<1x2x32xf32> -> vector<8x2x32xf32>
    %c0_38 = arith.constant 0 : index
    %c0_39 = arith.constant 0 : index
    %c0_40 = arith.constant 0 : index
    %167 = vector.load %arg5[%c0_38, %c0_39, %c0_40] : memref<8x2x32xf32, #tpu.memory_space<vmem>>, vector<8x2x32xf32>
    tpu.vector_store %arg5[%c0_38, %c0_39, %c0_40], %166 {strides = array<i32>} : memref<8x2x32xf32, #tpu.memory_space<vmem>>, vector<8x2x32xf32>,
    %c0_41 = arith.constant 0 : index
    %c0_42 = arith.constant 0 : index
    %168 = vector.load %arg7[%c0_41, %c0_42] : memref<2x32xf32, #tpu.memory_space<vmem>>, vector<2x32xf32>
    tpu.vector_store %arg7[%c0_41, %c0_42], %157 {strides = array<i32>} : memref<2x32xf32, #tpu.memory_space<vmem>>, vector<2x32xf32>,
    %c0_43 = arith.constant 0 : index
    %c0_44 = arith.constant 0 : index
    %169 = vector.load %arg8[%c0_43, %c0_44] : memref<2x32xf32, #tpu.memory_space<vmem>>, vector<2x32xf32>
    tpu.vector_store %arg8[%c0_43, %c0_44], %155 {strides = array<i32>} : memref<2x32xf32, #tpu.memory_space<vmem>>, vector<2x32xf32>,
    %c0_i32_45 = arith.constant 0 : i32
    %170 = arith.cmpi eq, %arg0, %c0_i32_45 : i32
    %171 = arith.extui %170 : i1 to i32
    %c0_i32_46 = arith.constant 0 : i32
    %172 = arith.cmpi ne, %171, %c0_i32_46 : i32
    scf.if %172 {
      %c0_47 = arith.constant 0 : index
      %c0_48 = arith.constant 0 : index
      %173 = vector.load %arg3[%c0_47, %c0_48] : memref<32x4xf32, #tpu.memory_space<vmem>>, vector<32x4xf32>
      %cst_49 = arith.constant dense<0.000000e+00> : vector<2x4xf32>
      %174 = tpu.matmul %157, %173, %cst_49 {dimension_numbers = #tpu.dot_dimension_numbers<[1], [0], [0], [1], [0, 0, 1, 1], [], []>} : vector<2x32xf32>, vector<32x4xf32>, vector<2x4xf32> -> vector<2x4xf32>
      %c0_50 = arith.constant 0 : index
      %c0_51 = arith.constant 0 : index
      %175 = vector.load %arg4[%c0_50, %c0_51] : memref<1x4xf32, #tpu.memory_space<vmem>>, vector<1x4xf32>
      %176 = vector.broadcast %175 : vector<1x4xf32> to vector<2x4xf32>
      %177 = arith.addf %174, %176 : vector<2x4xf32>
      %c0_52 = arith.constant 0 : index
      %c0_53 = arith.constant 0 : index
      %178 = vector.load %arg6[%c0_52, %c0_53] : memref<2x4xf32, #tpu.memory_space<vmem>>, vector<2x4xf32>
      tpu.vector_store %arg6[%c0_52, %c0_53], %177 {strides = array<i32>} : memref<2x4xf32, #tpu.memory_space<vmem>>, vector<2x4xf32>,
    } else {
    }
    return
  }
  func.func @transform_0(%arg0: i32) -> (i32, i32, i32) {
    %c0_i32 = arith.constant 0 : i32
    %c0_i32_0 = arith.constant 0 : i32
    %c0_i32_1 = arith.constant 0 : i32
    return %arg0, %c0_i32, %c0_i32_0 : i32, i32, i32
  }
  func.func @transform_1(%arg0: i32) -> (i32, i32) {
    %c0_i32 = arith.constant 0 : i32
    %c0_i32_0 = arith.constant 0 : i32
    %c0_i32_1 = arith.constant 0 : i32
    return %c0_i32, %c0_i32_0 : i32, i32
  }
  func.func @transform_2(%arg0: i32) -> (i32, i32) {
    %c0_i32 = arith.constant 0 : i32
    %c0_i32_0 = arith.constant 0 : i32
    %c0_i32_1 = arith.constant 0 : i32
    return %c0_i32, %c0_i32_0 : i32, i32
  }
  func.func @transform_3(%arg0: i32) -> (i32, i32) {
    %c0_i32 = arith.constant 0 : i32
    %c0_i32_0 = arith.constant 0 : i32
    %c0_i32_1 = arith.constant 0 : i32
    return %c0_i32, %c0_i32_0 : i32, i32
  }
  func.func @transform_4(%arg0: i32) -> (i32, i32, i32) {
    %c0_i32 = arith.constant 0 : i32
    %c0_i32_0 = arith.constant 0 : i32
    %c0_i32_1 = arith.constant 0 : i32
    return %arg0, %c0_i32, %c0_i32_0 : i32, i32, i32
  }
  func.func @transform_5(%arg0: i32) -> (i32, i32) {
    %c0_i32 = arith.constant 0 : i32
    %c0_i32_0 = arith.constant 0 : i32
    %c0_i32_1 = arith.constant 0 : i32
    return %c0_i32, %c0_i32_0 : i32, i32
  }
}

module attributes {stable_mosaic.version = 11 : i64} {
  func.func @lstm_block_kernel(%arg0: i32, %arg1: memref<8x2x128xf32, #tpu.memory_space<vmem>>, %arg2: memref<32x128xf32, #tpu.memory_space<vmem>>, %arg3: memref<32x4xf32, #tpu.memory_space<vmem>>, %arg4: memref<1x4xf32, #tpu.memory_space<vmem>>, %arg5: memref<8x2x32xf32, #tpu.memory_space<vmem>>, %arg6: memref<2x4xf32, #tpu.memory_space<vmem>>, %arg7: memref<2x32xf32, #tpu.memory_space<vmem>>, %arg8: memref<2x32xf32, #tpu.memory_space<vmem>>) attributes {dimension_semantics = [#tpu.dimension_semantics<arbitrary>], iteration_bounds = array<i64: 1>, scalar_prefetch = 0 : i64, scratch_operands = 2 : i64, tpu.core_type = #tpu.core_type<tc>, window_params = [{transform_indices = @transform_0, window_bounds = array<i64: 8, 2, 128>}, {pipeline_mode = #tpu.pipeline_mode<synchronous>, transform_indices = @transform_1, window_bounds = array<i64: 32, 128>}, {pipeline_mode = #tpu.pipeline_mode<synchronous>, transform_indices = @transform_2, window_bounds = array<i64: 32, 4>}, {pipeline_mode = #tpu.pipeline_mode<synchronous>, transform_indices = @transform_3, window_bounds = array<i64: 1, 4>}, {transform_indices = @transform_4, window_bounds = array<i64: 8, 2, 32>}, {pipeline_mode = #tpu.pipeline_mode<synchronous>, transform_indices = @transform_5, window_bounds = array<i64: 2, 4>}]} {
    %c0_i32 = arith.constant 0 : i32
    %0 = arith.cmpi eq, %arg0, %c0_i32 : i32
    %1 = arith.extui %0 : i1 to i32
    %c0_i32_0 = arith.constant 0 : i32
    %2 = arith.cmpi ne, %1, %c0_i32_0 : i32
    scf.if %2 {
      %cst_47 = arith.constant 0.000000e+00 : f32
      %173 = vector.broadcast %cst_47 : f32 to vector<2x32xf32>
      %c0_48 = arith.constant 0 : index
      %c0_49 = arith.constant 0 : index
      %174 = vector.load %arg7[%c0_48, %c0_49] : memref<2x32xf32, #tpu.memory_space<vmem>>, vector<2x32xf32>
      tpu.vector_store %arg7[%c0_48, %c0_49], %173 {strides = array<i32>} : memref<2x32xf32, #tpu.memory_space<vmem>>, vector<2x32xf32>,
      %cst_50 = arith.constant 0.000000e+00 : f32
      %175 = vector.broadcast %cst_50 : f32 to vector<2x32xf32>
      %c0_51 = arith.constant 0 : index
      %c0_52 = arith.constant 0 : index
      %176 = vector.load %arg8[%c0_51, %c0_52] : memref<2x32xf32, #tpu.memory_space<vmem>>, vector<2x32xf32>
      tpu.vector_store %arg8[%c0_51, %c0_52], %175 {strides = array<i32>} : memref<2x32xf32, #tpu.memory_space<vmem>>, vector<2x32xf32>,
    } else {
    }
    %c0 = arith.constant 0 : index
    %c0_1 = arith.constant 0 : index
    %3 = vector.load %arg7[%c0, %c0_1] : memref<2x32xf32, #tpu.memory_space<vmem>>, vector<2x32xf32>
    %c0_2 = arith.constant 0 : index
    %c0_3 = arith.constant 0 : index
    %4 = vector.load %arg8[%c0_2, %c0_3] : memref<2x32xf32, #tpu.memory_space<vmem>>, vector<2x32xf32>
    %c0_4 = arith.constant 0 : index
    %c0_5 = arith.constant 0 : index
    %5 = vector.load %arg2[%c0_4, %c0_5] : memref<32x128xf32, #tpu.memory_space<vmem>>, vector<32x128xf32>
    %c0_6 = arith.constant 0 : index
    %c0_7 = arith.constant 0 : index
    %c0_8 = arith.constant 0 : index
    %6 = vector.load %arg1[%c0_6, %c0_7, %c0_8] : memref<8x2x128xf32, #tpu.memory_space<vmem>>, vector<1x2x128xf32>
    %7 = vector.shape_cast %6 : vector<1x2x128xf32> to vector<2x128xf32>
    %cst = arith.constant dense<0.000000e+00> : vector<2x128xf32>
    %8 = tpu.matmul %3, %5, %cst {dimension_numbers = #tpu.dot_dimension_numbers<[1], [0], [0], [1], [0, 0, 1, 1], [], []>} : vector<2x32xf32>, vector<32x128xf32>, vector<2x128xf32> -> vector<2x128xf32>
    %9 = arith.addf %7, %8 : vector<2x128xf32>
    %10 = arith.negf %9 : vector<2x128xf32>
    %11 = math.exp %10 : vector<2x128xf32>
    %cst_9 = arith.constant 1.000000e+00 : f32
    %12 = vector.broadcast %cst_9 : f32 to vector<2x128xf32>
    %13 = arith.addf %12, %11 : vector<2x128xf32>
    %14 = arith.divf %12, %13 : vector<2x128xf32>
    %15 = math.tanh %9 : vector<2x128xf32>
    %16 = vector.extract_strided_slice %14 {offsets = [0, 0], sizes = [2, 32], strides = [1, 1]} : vector<2x128xf32> to vector<2x32xf32>
    %17 = vector.extract_strided_slice %14 {offsets = [0, 32], sizes = [2, 32], strides = [1, 1]} : vector<2x128xf32> to vector<2x32xf32>
    %18 = vector.extract_strided_slice %15 {offsets = [0, 64], sizes = [2, 32], strides = [1, 1]} : vector<2x128xf32> to vector<2x32xf32>
    %19 = vector.extract_strided_slice %14 {offsets = [0, 96], sizes = [2, 32], strides = [1, 1]} : vector<2x128xf32> to vector<2x32xf32>
    %20 = arith.mulf %17, %4 : vector<2x32xf32>
    %21 = arith.mulf %16, %18 : vector<2x32xf32>
    %22 = arith.addf %20, %21 : vector<2x32xf32>
    %23 = math.tanh %22 : vector<2x32xf32>
    %24 = arith.mulf %19, %23 : vector<2x32xf32>
    %c1 = arith.constant 1 : index
    %c0_10 = arith.constant 0 : index
    %c0_11 = arith.constant 0 : index
    %25 = vector.load %arg1[%c1, %c0_10, %c0_11] : memref<8x2x128xf32, #tpu.memory_space<vmem>>, vector<1x2x128xf32>
    %26 = vector.shape_cast %25 : vector<1x2x128xf32> to vector<2x128xf32>
    %cst_12 = arith.constant dense<0.000000e+00> : vector<2x128xf32>
    %27 = tpu.matmul %24, %5, %cst_12 {dimension_numbers = #tpu.dot_dimension_numbers<[1], [0], [0], [1], [0, 0, 1, 1], [], []>} : vector<2x32xf32>, vector<32x128xf32>, vector<2x128xf32> -> vector<2x128xf32>
    %28 = arith.addf %26, %27 : vector<2x128xf32>
    %29 = arith.negf %28 : vector<2x128xf32>
    %30 = math.exp %29 : vector<2x128xf32>
    %cst_13 = arith.constant 1.000000e+00 : f32
    %31 = vector.broadcast %cst_13 : f32 to vector<2x128xf32>
    %32 = arith.addf %31, %30 : vector<2x128xf32>
    %33 = arith.divf %31, %32 : vector<2x128xf32>
    %34 = math.tanh %28 : vector<2x128xf32>
    %35 = vector.extract_strided_slice %33 {offsets = [0, 0], sizes = [2, 32], strides = [1, 1]} : vector<2x128xf32> to vector<2x32xf32>
    %36 = vector.extract_strided_slice %33 {offsets = [0, 32], sizes = [2, 32], strides = [1, 1]} : vector<2x128xf32> to vector<2x32xf32>
    %37 = vector.extract_strided_slice %34 {offsets = [0, 64], sizes = [2, 32], strides = [1, 1]} : vector<2x128xf32> to vector<2x32xf32>
    %38 = vector.extract_strided_slice %33 {offsets = [0, 96], sizes = [2, 32], strides = [1, 1]} : vector<2x128xf32> to vector<2x32xf32>
    %39 = arith.mulf %36, %22 : vector<2x32xf32>
    %40 = arith.mulf %35, %37 : vector<2x32xf32>
    %41 = arith.addf %39, %40 : vector<2x32xf32>
    %42 = math.tanh %41 : vector<2x32xf32>
    %43 = arith.mulf %38, %42 : vector<2x32xf32>
    %c2 = arith.constant 2 : index
    %c0_14 = arith.constant 0 : index
    %c0_15 = arith.constant 0 : index
    %44 = vector.load %arg1[%c2, %c0_14, %c0_15] : memref<8x2x128xf32, #tpu.memory_space<vmem>>, vector<1x2x128xf32>
    %45 = vector.shape_cast %44 : vector<1x2x128xf32> to vector<2x128xf32>
    %cst_16 = arith.constant dense<0.000000e+00> : vector<2x128xf32>
    %46 = tpu.matmul %43, %5, %cst_16 {dimension_numbers = #tpu.dot_dimension_numbers<[1], [0], [0], [1], [0, 0, 1, 1], [], []>} : vector<2x32xf32>, vector<32x128xf32>, vector<2x128xf32> -> vector<2x128xf32>
    %47 = arith.addf %45, %46 : vector<2x128xf32>
    %48 = arith.negf %47 : vector<2x128xf32>
    %49 = math.exp %48 : vector<2x128xf32>
    %cst_17 = arith.constant 1.000000e+00 : f32
    %50 = vector.broadcast %cst_17 : f32 to vector<2x128xf32>
    %51 = arith.addf %50, %49 : vector<2x128xf32>
    %52 = arith.divf %50, %51 : vector<2x128xf32>
    %53 = math.tanh %47 : vector<2x128xf32>
    %54 = vector.extract_strided_slice %52 {offsets = [0, 0], sizes = [2, 32], strides = [1, 1]} : vector<2x128xf32> to vector<2x32xf32>
    %55 = vector.extract_strided_slice %52 {offsets = [0, 32], sizes = [2, 32], strides = [1, 1]} : vector<2x128xf32> to vector<2x32xf32>
    %56 = vector.extract_strided_slice %53 {offsets = [0, 64], sizes = [2, 32], strides = [1, 1]} : vector<2x128xf32> to vector<2x32xf32>
    %57 = vector.extract_strided_slice %52 {offsets = [0, 96], sizes = [2, 32], strides = [1, 1]} : vector<2x128xf32> to vector<2x32xf32>
    %58 = arith.mulf %55, %41 : vector<2x32xf32>
    %59 = arith.mulf %54, %56 : vector<2x32xf32>
    %60 = arith.addf %58, %59 : vector<2x32xf32>
    %61 = math.tanh %60 : vector<2x32xf32>
    %62 = arith.mulf %57, %61 : vector<2x32xf32>
    %c3 = arith.constant 3 : index
    %c0_18 = arith.constant 0 : index
    %c0_19 = arith.constant 0 : index
    %63 = vector.load %arg1[%c3, %c0_18, %c0_19] : memref<8x2x128xf32, #tpu.memory_space<vmem>>, vector<1x2x128xf32>
    %64 = vector.shape_cast %63 : vector<1x2x128xf32> to vector<2x128xf32>
    %cst_20 = arith.constant dense<0.000000e+00> : vector<2x128xf32>
    %65 = tpu.matmul %62, %5, %cst_20 {dimension_numbers = #tpu.dot_dimension_numbers<[1], [0], [0], [1], [0, 0, 1, 1], [], []>} : vector<2x32xf32>, vector<32x128xf32>, vector<2x128xf32> -> vector<2x128xf32>
    %66 = arith.addf %64, %65 : vector<2x128xf32>
    %67 = arith.negf %66 : vector<2x128xf32>
    %68 = math.exp %67 : vector<2x128xf32>
    %cst_21 = arith.constant 1.000000e+00 : f32
    %69 = vector.broadcast %cst_21 : f32 to vector<2x128xf32>
    %70 = arith.addf %69, %68 : vector<2x128xf32>
    %71 = arith.divf %69, %70 : vector<2x128xf32>
    %72 = math.tanh %66 : vector<2x128xf32>
    %73 = vector.extract_strided_slice %71 {offsets = [0, 0], sizes = [2, 32], strides = [1, 1]} : vector<2x128xf32> to vector<2x32xf32>
    %74 = vector.extract_strided_slice %71 {offsets = [0, 32], sizes = [2, 32], strides = [1, 1]} : vector<2x128xf32> to vector<2x32xf32>
    %75 = vector.extract_strided_slice %72 {offsets = [0, 64], sizes = [2, 32], strides = [1, 1]} : vector<2x128xf32> to vector<2x32xf32>
    %76 = vector.extract_strided_slice %71 {offsets = [0, 96], sizes = [2, 32], strides = [1, 1]} : vector<2x128xf32> to vector<2x32xf32>
    %77 = arith.mulf %74, %60 : vector<2x32xf32>
    %78 = arith.mulf %73, %75 : vector<2x32xf32>
    %79 = arith.addf %77, %78 : vector<2x32xf32>
    %80 = math.tanh %79 : vector<2x32xf32>
    %81 = arith.mulf %76, %80 : vector<2x32xf32>
    %c4 = arith.constant 4 : index
    %c0_22 = arith.constant 0 : index
    %c0_23 = arith.constant 0 : index
    %82 = vector.load %arg1[%c4, %c0_22, %c0_23] : memref<8x2x128xf32, #tpu.memory_space<vmem>>, vector<1x2x128xf32>
    %83 = vector.shape_cast %82 : vector<1x2x128xf32> to vector<2x128xf32>
    %cst_24 = arith.constant dense<0.000000e+00> : vector<2x128xf32>
    %84 = tpu.matmul %81, %5, %cst_24 {dimension_numbers = #tpu.dot_dimension_numbers<[1], [0], [0], [1], [0, 0, 1, 1], [], []>} : vector<2x32xf32>, vector<32x128xf32>, vector<2x128xf32> -> vector<2x128xf32>
    %85 = arith.addf %83, %84 : vector<2x128xf32>
    %86 = arith.negf %85 : vector<2x128xf32>
    %87 = math.exp %86 : vector<2x128xf32>
    %cst_25 = arith.constant 1.000000e+00 : f32
    %88 = vector.broadcast %cst_25 : f32 to vector<2x128xf32>
    %89 = arith.addf %88, %87 : vector<2x128xf32>
    %90 = arith.divf %88, %89 : vector<2x128xf32>
    %91 = math.tanh %85 : vector<2x128xf32>
    %92 = vector.extract_strided_slice %90 {offsets = [0, 0], sizes = [2, 32], strides = [1, 1]} : vector<2x128xf32> to vector<2x32xf32>
    %93 = vector.extract_strided_slice %90 {offsets = [0, 32], sizes = [2, 32], strides = [1, 1]} : vector<2x128xf32> to vector<2x32xf32>
    %94 = vector.extract_strided_slice %91 {offsets = [0, 64], sizes = [2, 32], strides = [1, 1]} : vector<2x128xf32> to vector<2x32xf32>
    %95 = vector.extract_strided_slice %90 {offsets = [0, 96], sizes = [2, 32], strides = [1, 1]} : vector<2x128xf32> to vector<2x32xf32>
    %96 = arith.mulf %93, %79 : vector<2x32xf32>
    %97 = arith.mulf %92, %94 : vector<2x32xf32>
    %98 = arith.addf %96, %97 : vector<2x32xf32>
    %99 = math.tanh %98 : vector<2x32xf32>
    %100 = arith.mulf %95, %99 : vector<2x32xf32>
    %c5 = arith.constant 5 : index
    %c0_26 = arith.constant 0 : index
    %c0_27 = arith.constant 0 : index
    %101 = vector.load %arg1[%c5, %c0_26, %c0_27] : memref<8x2x128xf32, #tpu.memory_space<vmem>>, vector<1x2x128xf32>
    %102 = vector.shape_cast %101 : vector<1x2x128xf32> to vector<2x128xf32>
    %cst_28 = arith.constant dense<0.000000e+00> : vector<2x128xf32>
    %103 = tpu.matmul %100, %5, %cst_28 {dimension_numbers = #tpu.dot_dimension_numbers<[1], [0], [0], [1], [0, 0, 1, 1], [], []>} : vector<2x32xf32>, vector<32x128xf32>, vector<2x128xf32> -> vector<2x128xf32>
    %104 = arith.addf %102, %103 : vector<2x128xf32>
    %105 = arith.negf %104 : vector<2x128xf32>
    %106 = math.exp %105 : vector<2x128xf32>
    %cst_29 = arith.constant 1.000000e+00 : f32
    %107 = vector.broadcast %cst_29 : f32 to vector<2x128xf32>
    %108 = arith.addf %107, %106 : vector<2x128xf32>
    %109 = arith.divf %107, %108 : vector<2x128xf32>
    %110 = math.tanh %104 : vector<2x128xf32>
    %111 = vector.extract_strided_slice %109 {offsets = [0, 0], sizes = [2, 32], strides = [1, 1]} : vector<2x128xf32> to vector<2x32xf32>
    %112 = vector.extract_strided_slice %109 {offsets = [0, 32], sizes = [2, 32], strides = [1, 1]} : vector<2x128xf32> to vector<2x32xf32>
    %113 = vector.extract_strided_slice %110 {offsets = [0, 64], sizes = [2, 32], strides = [1, 1]} : vector<2x128xf32> to vector<2x32xf32>
    %114 = vector.extract_strided_slice %109 {offsets = [0, 96], sizes = [2, 32], strides = [1, 1]} : vector<2x128xf32> to vector<2x32xf32>
    %115 = arith.mulf %112, %98 : vector<2x32xf32>
    %116 = arith.mulf %111, %113 : vector<2x32xf32>
    %117 = arith.addf %115, %116 : vector<2x32xf32>
    %118 = math.tanh %117 : vector<2x32xf32>
    %119 = arith.mulf %114, %118 : vector<2x32xf32>
    %c6 = arith.constant 6 : index
    %c0_30 = arith.constant 0 : index
    %c0_31 = arith.constant 0 : index
    %120 = vector.load %arg1[%c6, %c0_30, %c0_31] : memref<8x2x128xf32, #tpu.memory_space<vmem>>, vector<1x2x128xf32>
    %121 = vector.shape_cast %120 : vector<1x2x128xf32> to vector<2x128xf32>
    %cst_32 = arith.constant dense<0.000000e+00> : vector<2x128xf32>
    %122 = tpu.matmul %119, %5, %cst_32 {dimension_numbers = #tpu.dot_dimension_numbers<[1], [0], [0], [1], [0, 0, 1, 1], [], []>} : vector<2x32xf32>, vector<32x128xf32>, vector<2x128xf32> -> vector<2x128xf32>
    %123 = arith.addf %121, %122 : vector<2x128xf32>
    %124 = arith.negf %123 : vector<2x128xf32>
    %125 = math.exp %124 : vector<2x128xf32>
    %cst_33 = arith.constant 1.000000e+00 : f32
    %126 = vector.broadcast %cst_33 : f32 to vector<2x128xf32>
    %127 = arith.addf %126, %125 : vector<2x128xf32>
    %128 = arith.divf %126, %127 : vector<2x128xf32>
    %129 = math.tanh %123 : vector<2x128xf32>
    %130 = vector.extract_strided_slice %128 {offsets = [0, 0], sizes = [2, 32], strides = [1, 1]} : vector<2x128xf32> to vector<2x32xf32>
    %131 = vector.extract_strided_slice %128 {offsets = [0, 32], sizes = [2, 32], strides = [1, 1]} : vector<2x128xf32> to vector<2x32xf32>
    %132 = vector.extract_strided_slice %129 {offsets = [0, 64], sizes = [2, 32], strides = [1, 1]} : vector<2x128xf32> to vector<2x32xf32>
    %133 = vector.extract_strided_slice %128 {offsets = [0, 96], sizes = [2, 32], strides = [1, 1]} : vector<2x128xf32> to vector<2x32xf32>
    %134 = arith.mulf %131, %117 : vector<2x32xf32>
    %135 = arith.mulf %130, %132 : vector<2x32xf32>
    %136 = arith.addf %134, %135 : vector<2x32xf32>
    %137 = math.tanh %136 : vector<2x32xf32>
    %138 = arith.mulf %133, %137 : vector<2x32xf32>
    %c7 = arith.constant 7 : index
    %c0_34 = arith.constant 0 : index
    %c0_35 = arith.constant 0 : index
    %139 = vector.load %arg1[%c7, %c0_34, %c0_35] : memref<8x2x128xf32, #tpu.memory_space<vmem>>, vector<1x2x128xf32>
    %140 = vector.shape_cast %139 : vector<1x2x128xf32> to vector<2x128xf32>
    %cst_36 = arith.constant dense<0.000000e+00> : vector<2x128xf32>
    %141 = tpu.matmul %138, %5, %cst_36 {dimension_numbers = #tpu.dot_dimension_numbers<[1], [0], [0], [1], [0, 0, 1, 1], [], []>} : vector<2x32xf32>, vector<32x128xf32>, vector<2x128xf32> -> vector<2x128xf32>
    %142 = arith.addf %140, %141 : vector<2x128xf32>
    %143 = arith.negf %142 : vector<2x128xf32>
    %144 = math.exp %143 : vector<2x128xf32>
    %cst_37 = arith.constant 1.000000e+00 : f32
    %145 = vector.broadcast %cst_37 : f32 to vector<2x128xf32>
    %146 = arith.addf %145, %144 : vector<2x128xf32>
    %147 = arith.divf %145, %146 : vector<2x128xf32>
    %148 = math.tanh %142 : vector<2x128xf32>
    %149 = vector.extract_strided_slice %147 {offsets = [0, 0], sizes = [2, 32], strides = [1, 1]} : vector<2x128xf32> to vector<2x32xf32>
    %150 = vector.extract_strided_slice %147 {offsets = [0, 32], sizes = [2, 32], strides = [1, 1]} : vector<2x128xf32> to vector<2x32xf32>
    %151 = vector.extract_strided_slice %148 {offsets = [0, 64], sizes = [2, 32], strides = [1, 1]} : vector<2x128xf32> to vector<2x32xf32>
    %152 = vector.extract_strided_slice %147 {offsets = [0, 96], sizes = [2, 32], strides = [1, 1]} : vector<2x128xf32> to vector<2x32xf32>
    %153 = arith.mulf %150, %136 : vector<2x32xf32>
    %154 = arith.mulf %149, %151 : vector<2x32xf32>
    %155 = arith.addf %153, %154 : vector<2x32xf32>
    %156 = math.tanh %155 : vector<2x32xf32>
    %157 = arith.mulf %152, %156 : vector<2x32xf32>
    %158 = vector.shape_cast %24 : vector<2x32xf32> to vector<1x2x32xf32>
    %159 = vector.shape_cast %43 : vector<2x32xf32> to vector<1x2x32xf32>
    %160 = vector.shape_cast %62 : vector<2x32xf32> to vector<1x2x32xf32>
    %161 = vector.shape_cast %81 : vector<2x32xf32> to vector<1x2x32xf32>
    %162 = vector.shape_cast %100 : vector<2x32xf32> to vector<1x2x32xf32>
    %163 = vector.shape_cast %119 : vector<2x32xf32> to vector<1x2x32xf32>
    %164 = vector.shape_cast %138 : vector<2x32xf32> to vector<1x2x32xf32>
    %165 = vector.shape_cast %157 : vector<2x32xf32> to vector<1x2x32xf32>
    %166 = tpu.concatenate %158, %159, %160, %161, %162, %163, %164, %165 in 0 : vector<1x2x32xf32>, vector<1x2x32xf32>, vector<1x2x32xf32>, vector<1x2x32xf32>, vector<1x2x32xf32>, vector<1x2x32xf32>, vector<1x2x32xf32>, vector<1x2x32xf32> -> vector<8x2x32xf32>
    %c0_38 = arith.constant 0 : index
    %c0_39 = arith.constant 0 : index
    %c0_40 = arith.constant 0 : index
    %167 = vector.load %arg5[%c0_38, %c0_39, %c0_40] : memref<8x2x32xf32, #tpu.memory_space<vmem>>, vector<8x2x32xf32>
    tpu.vector_store %arg5[%c0_38, %c0_39, %c0_40], %166 {strides = array<i32>} : memref<8x2x32xf32, #tpu.memory_space<vmem>>, vector<8x2x32xf32>,
    %c0_41 = arith.constant 0 : index
    %c0_42 = arith.constant 0 : index
    %168 = vector.load %arg7[%c0_41, %c0_42] : memref<2x32xf32, #tpu.memory_space<vmem>>, vector<2x32xf32>
    tpu.vector_store %arg7[%c0_41, %c0_42], %157 {strides = array<i32>} : memref<2x32xf32, #tpu.memory_space<vmem>>, vector<2x32xf32>,
    %c0_43 = arith.constant 0 : index
    %c0_44 = arith.constant 0 : index
    %169 = vector.load %arg8[%c0_43, %c0_44] : memref<2x32xf32, #tpu.memory_space<vmem>>, vector<2x32xf32>
    tpu.vector_store %arg8[%c0_43, %c0_44], %155 {strides = array<i32>} : memref<2x32xf32, #tpu.memory_space<vmem>>, vector<2x32xf32>,
    %c0_i32_45 = arith.constant 0 : i32
    %170 = arith.cmpi eq, %arg0, %c0_i32_45 : i32
    %171 = arith.extui %170 : i1 to i32
    %c0_i32_46 = arith.constant 0 : i32
    %172 = arith.cmpi ne, %171, %c0_i32_46 : i32
    scf.if %172 {
      %c0_47 = arith.constant 0 : index
      %c0_48 = arith.constant 0 : index
      %173 = vector.load %arg3[%c0_47, %c0_48] : memref<32x4xf32, #tpu.memory_space<vmem>>, vector<32x4xf32>
      %cst_49 = arith.constant dense<0.000000e+00> : vector<2x4xf32>
      %174 = tpu.matmul %157, %173, %cst_49 {dimension_numbers = #tpu.dot_dimension_numbers<[1], [0], [0], [1], [0, 0, 1, 1], [], []>} : vector<2x32xf32>, vector<32x4xf32>, vector<2x4xf32> -> vector<2x4xf32>
      %c0_50 = arith.constant 0 : index
      %c0_51 = arith.constant 0 : index
      %175 = vector.load %arg4[%c0_50, %c0_51] : memref<1x4xf32, #tpu.memory_space<vmem>>, vector<1x4xf32>
      %176 = vector.broadcast %175 : vector<1x4xf32> to vector<2x4xf32>
      %177 = arith.addf %174, %176 : vector<2x4xf32>
      %c0_52 = arith.constant 0 : index
      %c0_53 = arith.constant 0 : index
      %178 = vector.load %arg6[%c0_52, %c0_53] : memref<2x4xf32, #tpu.memory_space<vmem>>, vector<2x4xf32>
      tpu.vector_store %arg6[%c0_52, %c0_53], %177 {strides = array<i32>} : memref<2x4xf32, #tpu.memory_space<vmem>>, vector<2x4xf32>,
    } else {
    }
    return
  }
  func.func @transform_0(%arg0: i32) -> (i32, i32, i32) {
    %c0_i32 = arith.constant 0 : i32
    %c0_i32_0 = arith.constant 0 : i32
    %c0_i32_1 = arith.constant 0 : i32
    return %arg0, %c0_i32, %c0_i32_0 : i32, i32, i32
  }
  func.func @transform_1(%arg0: i32) -> (i32, i32) {
    %c0_i32 = arith.constant 0 : i32
    %c0_i32_0 = arith.constant 0 : i32
    %c0_i32_1 = arith.constant 0 : i32
    return %c0_i32, %c0_i32_0 : i32, i32
  }
  func.func @transform_2(%arg0: i32) -> (i32, i32) {
    %c0_i32 = arith.constant 0 : i32
    %c0_i32_0 = arith.constant 0 : i32
    %c0_i32_1 = arith.constant 0 : i32
    return %c0_i32, %c0_i32_0 : i32, i32
  }
  func.func @transform_3(%arg0: i32) -> (i32, i32) {
    %c0_i32 = arith.constant 0 : i32
    %c0_i32_0 = arith.constant 0 : i32
    %c0_i32_1 = arith.constant 0 : i32
    return %c0_i32, %c0_i32_0 : i32, i32
  }
  func.func @transform_4(%arg0: i32) -> (i32, i32, i32) {
    %c0_i32 = arith.constant 0 : i32
    %c0_i32_0 = arith.constant 0 : i32
    %c0_i32_1 = arith.constant 0 : i32
    return %arg0, %c0_i32, %c0_i32_0 : i32, i32, i32
  }
  func.func @transform_5(%arg0: i32) -> (i32, i32) {
    %c0_i32 = arith.constant 0 : i32
    %c0_i32_0 = arith.constant 0 : i32
    %c0_i32_1 = arith.constant 0 : i32
    return %c0_i32, %c0_i32_0 : i32, i32
  }
}

</mosaic_0001>

<bundles_post_ra>
// kernel: single_lstm_forward.4
= control target key start
LH: loop header
LB: loop body
LE: loop exit
PB: predicated region body
PF: predicated region fallthrough
CT: control target
= control target key end

     0   :  { %8 = vsyncpa [#allocation3], 0  ;;  %s109_s15 = smov [#allocation2]   ;;  %s110_s17 = smov 128   ;;  %s150_s0 = inlined_call_operand.vmem [shape: f32[16,16], index: 0, kind: input, shape index: {}]   ;;  %s151_s1 = inlined_call_operand.hbm [shape: f32[16,128], index: 1, kind: input, shape index: {}]   ;;  %s152_s2 = inlined_call_operand.vmem [shape: f32[1,128], index: 2, kind: input, shape index: {}]   ;;  %s153_s3 = inlined_call_operand.vmem [shape: f32[16,128], index: 3, kind: output, shape index: {}]  }
   0x1   :  { %s15_s14 = sshll.u32 %s151_s1, 4  ;;  %s17_s16 = sshll.u32 %s109_s15, 4  ;;  %s16_s14 = int_to_ptr.hbm [resolvable:$true] %s15_s14  ;;  %s18_s16 = int_to_ptr.vmem [resolvable:$true] %s17_s16 }
   0x2   :  { %s111_s18 = smov 8  }
   0x3   :  { %23 = dma.hbm_to_vmem [thread:$0]  %s16_s14, 256, %s18_s16, [#allocation3], %s110_s17, %s110_s17, %s111_s18  }
   0x4   :  { %107 = dma.done.wait [#allocation3], 256  }
   0x5   :  { %108 = vsyncadd [#allocation3], 4294967040  ;;  %v33_v0 = vld [vmem:[#allocation2 + $0x8] sm:$0xff]  ;;  %v32_v1 = vld [vmem:[#allocation2] sm:$0xff]  ;;  %vm38_vm0 = vcmask 130048  }
   0x6   :  { %59 = vmatpush.msra.mxu0 %v33_v0  ;;  %77 = vmatpush.msra.mxu1 %v33_v0  ;;  %v30_v2 = vld [vmem:[%s150_s0] sm:$0xff]  ;;  %v31_v3 = vld [vmem:[%s150_s0 + $0x8] sm:$0xff] }
   0x7   :  { %v82_v4 = vld [vmem:[%s152_s2] ss:$0 sm:$0xff] }
   0x8   :  { %60 = vmatpush.msra.mxu0 %v32_v1  ;;  %78 = vmatpush.msra.mxu1 %v32_v1 }
   0x9   :  { %75 = vmatmul.msk.f32.vlgmr.msra.gmra.mxu0 %vm38_vm0, %v30_v2  ;;  %76 = vmatmul.msk.f32.vlgmr.msra.gmra.mxu1 %vm38_vm0, %v31_v3 }
  0x86   :  { %v62_v5 = vpop.f32.mrf.mxu0  ;;  %v65_v6 = vpop.f32.mrf.mxu1 }
  0x87   :  { %v63_v7 = vadd.f32 %v82_v4, %v62_v5  ;;  %v66_v8 = vadd.f32 %v82_v4, %v65_v6 }
  0x89   :  { %68 = vst [vmem:[%s153_s3] sm:$0xff] %v63_v7 }
  0x8a   :  { %69 = vst [vmem:[%s153_s3 + $0x8] sm:$0xff] %v66_v8 }
  0x8b   :  { %74 = vsyncpa [#allocation3], 1 }

// kernel: single_lstm_forward.6
= control target key start
LH: loop header
LB: loop body
LE: loop exit
PB: predicated region body
PF: predicated region fallthrough
CT: control target
= control target key end

     0   :  { %vm24_vm0 = vcmask 261120   ;;  %s114_s1 = inlined_call_operand.vmem [shape: f32[32,128], index: 1, kind: input, shape index: {}]   ;;  %s115_s2 = inlined_call_operand.vmem [shape: f32[1,128], index: 2, kind: input, shape index: {}]   ;;  %s116_s0 = inlined_call_operand.vmem [shape: f32[16,32], index: 0, kind: input, shape index: {}]   ;;  %s117_s3 = inlined_call_operand.vmem [shape: f32[16,128], index: 3, kind: output, shape index: {}]  }
   0x1   :  { %v19_v0 = vld [vmem:[%s114_s1 + $0x18] sm:$0xff]  ;;  %v18_v1 = vld [vmem:[%s114_s1 + $0x10] sm:$0xff]  ;;  %v17_v2 = vld [vmem:[%s114_s1 + $0x8] sm:$0xff] }
   0x2   :  { %43 = vmatpush.msra.mxu0 %v19_v0  ;;  %62 = vmatpush.msra.mxu1 %v19_v0  ;;  %v16_v3 = vld [vmem:[%s114_s1] sm:$0xff]  ;;  %v15_v5 = vld [vmem:[%s116_s0 + $0x8] sm:$0xff] }
   0x3   :  { %v14_v4 = vld [vmem:[%s116_s0] sm:$0xff] }
   0x4   :  { %44 = vmatpush.msra.mxu0 %v18_v1  ;;  %63 = vmatpush.msra.mxu1 %v18_v1  ;;  %v66_v6 = vld [vmem:[%s115_s2] ss:$0 sm:$0xff] }
   0x6   :  { %45 = vmatpush.msra.mxu0 %v17_v2  ;;  %64 = vmatpush.msra.mxu1 %v17_v2 }
   0x8   :  { %46 = vmatpush.msra.mxu0 %v16_v3  ;;  %65 = vmatpush.msra.mxu1 %v16_v3 }
   0x9   :  { %60 = vmatmul.msk.f32.vlgmr.msra.gmra.mxu0 %vm24_vm0, %v14_v4  ;;  %61 = vmatmul.msk.f32.vlgmr.msra.gmra.mxu1 %vm24_vm0, %v15_v5 }
  0x86   :  { %v48_v7 = vpop.f32.mrf.mxu0  ;;  %v51_v8 = vpop.f32.mrf.mxu1 }
  0x87   :  { %v49_v9 = vadd.f32 %v66_v6, %v48_v7  ;;  %v52_v10 = vadd.f32 %v66_v6, %v51_v8 }
  0x89   :  { %54 = vst [vmem:[%s117_s3] sm:$0xff] %v49_v9 }
  0x8a   :  { %55 = vst [vmem:[%s117_s3 + $0x8] sm:$0xff] %v52_v10 }

// kernel: single_lstm_forward.7
= control target key start
LH: loop header
LB: loop body
LE: loop exit
PB: predicated region body
PF: predicated region fallthrough
CT: control target
= control target key end

     0   :  { %11 = vsyncpa [#allocation5], 0  ;;  %s948_s0 = inlined_call_operand.vmem [shape: f32[8,2,128], index: 0, kind: input, shape index: {}]   ;;  %s949_s1 = inlined_call_operand.hbm [shape: f32[32,128], index: 1, kind: input, shape index: {}]   ;;  %s950_s2 = inlined_call_operand.vmem [shape: f32[32,4], index: 2, kind: input, shape index: {}]   ;;  %s951_s3 = inlined_call_operand.vmem [shape: f32[1,4], index: 3, kind: input, shape index: {}]   ;;  %s952_s4 = inlined_call_operand.hbm [shape: f32[8,2,32], index: 4, kind: output, shape index: {0}]   ;;  %s953_s5 = inlined_call_operand.vmem [shape: f32[2,4], index: 5, kind: output, shape index: {1}]  }
   0x1   :  { %12 = vsyncpa [#allocation6], 0  ;;  %s19_s20 = sshll.u32 %s949_s1, 4  ;;  %s805_s21 = smov [#allocation4]   ;;  %s20_s20 = int_to_ptr.hbm [resolvable:$true] %s19_s20 }
   0x2   :  { %s21_s22 = sshll.u32 %s805_s21, 4  ;;  %s806_s23 = smov 128   ;;  %s22_s22 = int_to_ptr.vmem [resolvable:$true] %s21_s22 }
   0x3   :  { %s807_s24 = smov 8  }
   0x4   :  { %27 = dma.hbm_to_vmem [thread:$0]  %s20_s20, 512, %s22_s22, [#allocation5], %s806_s23, %s806_s23, %s807_s24  }
   0x5   :  { %801 = dma.done.wait [#allocation5], 512  }
   0x6   :  { %802 = vsyncadd [#allocation5], 4294966784  ;;  %vm40_vm0 = vcmask 254976   ;;  %v808_v0 = vmov 0.0   ;;  %v48_v1 = vld [vmem:[#allocation4 + $0x18] sm:$0xff]  ;;  %v47_v2 = vld [vmem:[#allocation4 + $0x10] sm:$0xff] }
   0x7   :  { %41 = vst.msk [vmem:[#allocation2] sm:$0x3] %vm40_vm0, %v808_v0  ;;  %66 = vmatpush.msra.mxu0 %v48_v1  ;;  %135 = vmatpush.msra.mxu1 %v48_v1  ;;  %v46_v3 = vld [vmem:[#allocation4 + $0x8] sm:$0xff]  ;;  %v45_v4 = vld [vmem:[#allocation4] sm:$0xff]  ;;  %vm50_vm1 = vcmask 261120   ;;  %s809_s26 = smov 64  }
   0x8   :  { %42 = vst.msk [vmem:[#allocation3] sm:$0x3] %vm40_vm0, %v808_v0  ;;  %200 = vmatpush.msra.mxu2 %v48_v1  ;;  %265 = vmatpush.msra.mxu3 %v48_v1  ;;  %v49_v6 = vld [vmem:[%s948_s0] sm:$0x3]  ;;  %s810_s27 = smov 32   ;;  %s812_s1 = smov [#allocation7]  }
   0x9   :  { %67 = vmatpush.msra.mxu0 %v47_v2  ;;  %136 = vmatpush.msra.mxu1 %v47_v2  ;;  %v657_v34 = vld [vmem:[%s948_s0 + $0x2] sm:$0x3]  ;;  %v660_v60 = vld [vmem:[%s948_s0 + $0x4] sm:$0x3]  ;;  %s636_s25 = sshll.u32 %s812_s1, 4  ;;  %s638_s29 = sshll.u32 %s952_s4, 4  ;;  %s637_s25 = int_to_ptr.vmem [resolvable:$true] %s636_s25  ;;  %s639_s29 = int_to_ptr.hbm [resolvable:$true] %s638_s29 }
   0xa   :  { %201 = vmatpush.msra.mxu2 %v47_v2  ;;  %266 = vmatpush.msra.mxu3 %v47_v2 }
   0xb   :  { %68 = vmatpush.msra.mxu0 %v46_v3  ;;  %137 = vmatpush.msra.mxu1 %v46_v3 }
   0xc   :  { %202 = vmatpush.msra.mxu2 %v46_v3  ;;  %267 = vmatpush.msra.mxu3 %v46_v3 }
   0xd   :  { %69 = vmatpush.msra.mxu0 %v45_v4  ;;  %138 = vmatpush.msra.mxu1 %v45_v4 }
   0xe   :  { %v43_v5 = vld [vmem:[#allocation2] sm:$0x3]  ;;  %203 = vmatpush.msra.mxu2 %v45_v4  ;;  %268 = vmatpush.msra.mxu3 %v45_v4 }
   0xf   :  { %655 = vmatmul.msk.f32.vlgmr.msra.gmra.mxu0 %vm50_vm1, %v43_v5  ;;  %395 = vmatpush.msrb.mxu1 %v48_v1  ;;  %v44_v10 = vld [vmem:[#allocation3] sm:$0x3] }
  0x10   :  { %330 = vmatpush.msrb.mxu0 %v48_v1  ;;  %460 = vmatpush.msrb.mxu2 %v48_v1 }
  0x11   :  { %525 = vmatpush.msrb.mxu3 %v48_v1  ;;  %396 = vmatpush.msrb.mxu1 %v47_v2 }
  0x12   :  { %331 = vmatpush.msrb.mxu0 %v47_v2  ;;  %461 = vmatpush.msrb.mxu2 %v47_v2 }
  0x13   :  { %526 = vmatpush.msrb.mxu3 %v47_v2  ;;  %397 = vmatpush.msrb.mxu1 %v46_v3 }
  0x14   :  { %332 = vmatpush.msrb.mxu0 %v46_v3  ;;  %462 = vmatpush.msrb.mxu2 %v46_v3 }
  0x15   :  { %527 = vmatpush.msrb.mxu3 %v46_v3  ;;  %398 = vmatpush.msrb.mxu1 %v45_v4 }
  0x16   :  { %333 = vmatpush.msrb.mxu0 %v45_v4  ;;  %463 = vmatpush.msrb.mxu2 %v45_v4 }
  0x17   :  { %528 = vmatpush.msrb.mxu3 %v45_v4 }
  0x8c   :  { %v71_v7 = vpop.f32.mrf.mxu0 }
  0x8d   :  { %v74_v8 = vadd.f32 %v71_v7, %v49_v6 }
  0x8f   :  { %689 = vtanh.f32 %v74_v8  ;;  %v656_v11 = vmul.f32 -1.442695, %v74_v8 }
  0x91   :  { %691 = vpow2.f32 %v656_v11 }
  0x95   :  { %v690_v9 = vpop.eup %689 }
  0x96   :  { %101 = vrot.lane.b32.xlu0 %v690_v9, %s809_s26 }
  0x97   :  { %v692_v12 = vpop.eup %691 }
  0x98   :  { %v78_v13 = vadd.f32 1.0, %v692_v12 }
  0x9a   :  { %693 = vrcp.f32 %v78_v13  ;;  %v90_v19 = vand.u32 2147483648, %v78_v13  ;;  %vm84_vm3 = vweird.f32 %v78_v13  ;;  %v88_v20 = vand.u32 2147483647, %v78_v13 }
  0x9c   :  { %v91_v22 = vor.u32 1.1754944e-38, %v90_v19  ;;  %vm89_vm5 = vcmp.eq.f32.partialorder %v88_v20, 8.507059e+37 }
  0x9e   :  { %96 = vrot.lane.b32.xlu0 %v44_v10, %s810_s27 }
  0xa0   :  { %v694_v14 = vpop.eup %693 }
  0xa1   :  { %v80_v15 = vmul.f32 %v694_v14, %v78_v13  ;;  %vm85_vm2 = vweird.f32 %v694_v14 }
  0xa2   :  { %vm86_vm4 = vmor %vm84_vm3, %vm85_vm2 }
  0xa3   :  { %v81_v16 = vsub.f32 1.0, %v80_v15 }
  0xa5   :  { %v82_v17 = vmul.f32 %v694_v14, %v81_v16 }
  0xa7   :  { %v83_v18 = vadd.f32 %v694_v14, %v82_v17 }
  0xa9   :  { %v87_v21 = vsel %vm86_vm4, %v694_v14, %v83_v18 }
  0xaa   :  { %v92_v24 = vsel %vm89_vm5, %v91_v22, %v87_v21  ;;  %v663_v22 = vld [vmem:[%s948_s0 + $0x6] sm:$0x3] }
 0x108   :  { %v102_v23 = vpop.permute.xlu0 %101 }
 0x109   :  { %v104_v25 = vmul.f32 %v102_v23, %v92_v24 }
 0x10b   :  { %106 = vrot.lane.b32.xlu1 %v104_v25, %s810_s27 }
 0x110   :  { %v97_v26 = vpop.permute.xlu0 %96 }
 0x111   :  { %v99_v27 = vmul.f32 %v97_v26, %v92_v24 }
 0x17d   :  { %v107_v28 = vpop.permute.xlu1 %106 }
 0x17e   :  { %v109_v29 = vadd.f32 %v107_v28, %v99_v27 }
 0x180   :  { %695 = vtanh.f32 %v109_v29 }
 0x186   :  { %v696_v30 = vpop.eup %695 }
 0x187   :  { %112 = vrot.lane.b32.xlu1 %v696_v30, %s809_s26 }
 0x1f9   :  { %v113_v31 = vpop.permute.xlu1 %112 }
 0x1fa   :  { %v115_v32 = vmul.f32 %v113_v31, %v92_v24 }
 0x1fc   :  { %119 = vrot.lane.b32.xlu2 %v115_v32, %s810_s27 }
 0x256   :  { %v120_v33 = vpop.permute.xlu2 %119 }
 0x257   :  { %583 = vst.msk [vmem:[#allocation7] sm:$0x3] %vm40_vm0, %v120_v33  ;;  %658 = vmatmul.msk.f32.vlgmr.msra.gmra.mxu1 %vm50_vm1, %v120_v33 }
 0x2d4   :  { %v140_v35 = vpop.f32.mrf.mxu1 }
 0x2d5   :  { %v143_v36 = vadd.f32 %v657_v34, %v140_v35 }
 0x2d7   :  { %697 = vtanh.f32 %v143_v36  ;;  %v659_v38 = vmul.f32 -1.442695, %v143_v36 }
 0x2d9   :  { %699 = vpow2.f32 %v659_v38 }
 0x2dd   :  { %v698_v37 = vpop.eup %697 }
 0x2de   :  { %166 = vrot.lane.b32.xlu2 %v698_v37, %s809_s26 }
 0x2df   :  { %v700_v39 = vpop.eup %699 }
 0x2e0   :  { %v147_v40 = vadd.f32 1.0, %v700_v39 }
 0x2e2   :  { %701 = vrcp.f32 %v147_v40  ;;  %v159_v46 = vand.u32 2147483648, %v147_v40  ;;  %vm153_vm7 = vweird.f32 %v147_v40  ;;  %v157_v47 = vand.u32 2147483647, %v147_v40 }
 0x2e4   :  { %v160_v49 = vor.u32 1.1754944e-38, %v159_v46  ;;  %vm158_vm9 = vcmp.eq.f32.partialorder %v157_v47, 8.507059e+37 }
 0x2e8   :  { %v702_v41 = vpop.eup %701 }
 0x2e9   :  { %v149_v42 = vmul.f32 %v702_v41, %v147_v40  ;;  %vm154_vm6 = vweird.f32 %v702_v41 }
 0x2ea   :  { %vm155_vm8 = vmor %vm153_vm7, %vm154_vm6 }
 0x2eb   :  { %v150_v43 = vsub.f32 1.0, %v149_v42 }
 0x2ed   :  { %v151_v44 = vmul.f32 %v702_v41, %v150_v43 }
 0x2ef   :  { %v152_v45 = vadd.f32 %v702_v41, %v151_v44 }
 0x2f1   :  { %v156_v48 = vsel %vm155_vm8, %v702_v41, %v152_v45 }
 0x2f2   :  { %v161_v51 = vsel %vm158_vm9, %v160_v49, %v156_v48  ;;  %v666_v48 = vld [vmem:[%s948_s0 + $0x8] sm:$0x3] }
 0x2f3   :  { %v164_v53 = vmul.f32 %v161_v51, %v109_v29 }
 0x338   :  { %v167_v50 = vpop.permute.xlu2 %166 }
 0x339   :  { %v169_v52 = vmul.f32 %v167_v50, %v161_v51 }
 0x33b   :  { %171 = vrot.lane.b32.xlu0 %v169_v52, %s810_s27 }
 0x3ad   :  { %v172_v54 = vpop.permute.xlu0 %171 }
 0x3ae   :  { %v174_v55 = vadd.f32 %v172_v54, %v164_v53 }
 0x3b0   :  { %703 = vtanh.f32 %v174_v55 }
 0x3b6   :  { %v704_v56 = vpop.eup %703 }
 0x3b7   :  { %177 = vrot.lane.b32.xlu1 %v704_v56, %s809_s26 }
 0x429   :  { %v178_v57 = vpop.permute.xlu1 %177 }
 0x42a   :  { %v180_v58 = vmul.f32 %v178_v57, %v161_v51 }
 0x42c   :  { %184 = vrot.lane.b32.xlu2 %v180_v58, %s810_s27 }
 0x486   :  { %v185_v59 = vpop.permute.xlu2 %184 }
 0x487   :  { %584 = vst.msk [vmem:[#allocation7 + $0x2] sm:$0x3] %vm40_vm0, %v185_v59  ;;  %661 = vmatmul.msk.f32.vlgmr.msra.gmra.mxu2 %vm50_vm1, %v185_v59 }
 0x50a   :  { %v205_v61 = vpop.f32.mrf.mxu2 }
 0x50b   :  { %v208_v62 = vadd.f32 %v660_v60, %v205_v61 }
 0x50d   :  { %705 = vtanh.f32 %v208_v62  ;;  %v662_v0 = vmul.f32 -1.442695, %v208_v62 }
 0x50f   :  { %707 = vpow2.f32 %v662_v0 }
 0x513   :  { %v706_v63 = vpop.eup %705 }
 0x514   :  { %231 = vrot.lane.b32.xlu0 %v706_v63, %s809_s26 }
 0x515   :  { %v708_v1 = vpop.eup %707 }
 0x516   :  { %v212_v2 = vadd.f32 1.0, %v708_v1 }
 0x518   :  { %709 = vrcp.f32 %v212_v2  ;;  %v224_v8 = vand.u32 2147483648, %v212_v2  ;;  %vm218_vm11 = vweird.f32 %v212_v2  ;;  %v222_v9 = vand.u32 2147483647, %v212_v2 }
 0x51a   :  { %v225_v11 = vor.u32 1.1754944e-38, %v224_v8  ;;  %vm223_vm13 = vcmp.eq.f32.partialorder %v222_v9, 8.507059e+37 }
 0x51e   :  { %v710_v3 = vpop.eup %709 }
 0x51f   :  { %v214_v4 = vmul.f32 %v710_v3, %v212_v2  ;;  %vm219_vm10 = vweird.f32 %v710_v3 }
 0x520   :  { %vm220_vm12 = vmor %vm218_vm11, %vm219_vm10 }
 0x521   :  { %v215_v5 = vsub.f32 1.0, %v214_v4 }
 0x523   :  { %v216_v6 = vmul.f32 %v710_v3, %v215_v5 }
 0x525   :  { %v217_v7 = vadd.f32 %v710_v3, %v216_v6 }
 0x527   :  { %v221_v10 = vsel %vm220_vm12, %v710_v3, %v217_v7 }
 0x528   :  { %v226_v13 = vsel %vm223_vm13, %v225_v11, %v221_v10  ;;  %v669_v10 = vld [vmem:[%s948_s0 + $0xa] sm:$0x3] }
 0x529   :  { %v229_v15 = vmul.f32 %v226_v13, %v174_v55 }
 0x586   :  { %v232_v12 = vpop.permute.xlu0 %231 }
 0x587   :  { %v234_v14 = vmul.f32 %v232_v12, %v226_v13 }
 0x589   :  { %236 = vrot.lane.b32.xlu1 %v234_v14, %s810_s27 }
 0x5fb   :  { %v237_v16 = vpop.permute.xlu1 %236 }
 0x5fc   :  { %v239_v17 = vadd.f32 %v237_v16, %v229_v15 }
 0x5fe   :  { %711 = vtanh.f32 %v239_v17 }
 0x604   :  { %v712_v18 = vpop.eup %711 }
 0x605   :  { %242 = vrot.lane.b32.xlu2 %v712_v18, %s809_s26 }
 0x65f   :  { %v243_v19 = vpop.permute.xlu2 %242 }
 0x660   :  { %v245_v20 = vmul.f32 %v243_v19, %v226_v13 }
 0x662   :  { %249 = vrot.lane.b32.xlu0 %v245_v20, %s810_s27 }
 0x6d4   :  { %v250_v21 = vpop.permute.xlu0 %249 }
 0x6d5   :  { %585 = vst.msk [vmem:[#allocation7 + $0x4] sm:$0x3] %vm40_vm0, %v250_v21  ;;  %664 = vmatmul.msk.f32.vlgmr.msra.gmra.mxu3 %vm50_vm1, %v250_v21 }
 0x758   :  { %v270_v23 = vpop.f32.mrf.mxu3 }
 0x759   :  { %v273_v24 = vadd.f32 %v663_v22, %v270_v23 }
 0x75b   :  { %713 = vtanh.f32 %v273_v24  ;;  %v665_v26 = vmul.f32 -1.442695, %v273_v24 }
 0x75d   :  { %715 = vpow2.f32 %v665_v26 }
 0x761   :  { %v714_v25 = vpop.eup %713 }
 0x762   :  { %296 = vrot.lane.b32.xlu1 %v714_v25, %s809_s26 }
 0x763   :  { %v716_v27 = vpop.eup %715 }
 0x764   :  { %v277_v28 = vadd.f32 1.0, %v716_v27 }
 0x766   :  { %717 = vrcp.f32 %v277_v28  ;;  %v289_v34 = vand.u32 2147483648, %v277_v28  ;;  %vm283_vm15 = vweird.f32 %v277_v28  ;;  %v287_v35 = vand.u32 2147483647, %v277_v28 }
 0x768   :  { %v290_v37 = vor.u32 1.1754944e-38, %v289_v34  ;;  %vm288_vm3 = vcmp.eq.f32.partialorder %v287_v35, 8.507059e+37 }
 0x76c   :  { %v718_v29 = vpop.eup %717 }
 0x76d   :  { %v279_v30 = vmul.f32 %v718_v29, %v277_v28  ;;  %vm284_vm14 = vweird.f32 %v718_v29 }
 0x76e   :  { %vm285_vm2 = vmor %vm283_vm15, %vm284_vm14 }
 0x76f   :  { %v280_v31 = vsub.f32 1.0, %v279_v30 }
 0x771   :  { %v281_v32 = vmul.f32 %v718_v29, %v280_v31 }
 0x773   :  { %v282_v33 = vadd.f32 %v718_v29, %v281_v32 }
 0x775   :  { %v286_v36 = vsel %vm285_vm2, %v718_v29, %v282_v33 }
 0x776   :  { %v291_v39 = vsel %vm288_vm3, %v290_v37, %v286_v36  ;;  %v672_v36 = vld [vmem:[%s948_s0 + $0xc] sm:$0x3] }
 0x777   :  { %v294_v41 = vmul.f32 %v291_v39, %v239_v17 }
 0x7d4   :  { %v297_v38 = vpop.permute.xlu1 %296 }
 0x7d5   :  { %v299_v40 = vmul.f32 %v297_v38, %v291_v39 }
 0x7d7   :  { %301 = vrot.lane.b32.xlu2 %v299_v40, %s810_s27 }
 0x831   :  { %v302_v42 = vpop.permute.xlu2 %301 }
 0x832   :  { %v304_v43 = vadd.f32 %v302_v42, %v294_v41 }
 0x834   :  { %719 = vtanh.f32 %v304_v43 }
 0x83a   :  { %v720_v44 = vpop.eup %719 }
 0x83b   :  { %307 = vrot.lane.b32.xlu0 %v720_v44, %s809_s26 }
 0x8ad   :  { %v308_v45 = vpop.permute.xlu0 %307 }
 0x8ae   :  { %v310_v46 = vmul.f32 %v308_v45, %v291_v39 }
 0x8b0   :  { %314 = vrot.lane.b32.xlu1 %v310_v46, %s810_s27 }
 0x922   :  { %v315_v47 = vpop.permute.xlu1 %314 }
 0x923   :  { %586 = vst.msk [vmem:[#allocation7 + $0x6] sm:$0x3] %vm40_vm0, %v315_v47  ;;  %667 = vmatmul.msk.f32.vlgmr.msrb.gmra.mxu0 %vm50_vm1, %v315_v47 }
 0x9a0   :  { %v335_v49 = vpop.f32.mrf.mxu0 }
 0x9a1   :  { %v338_v50 = vadd.f32 %v666_v48, %v335_v49 }
 0x9a3   :  { %721 = vtanh.f32 %v338_v50  ;;  %v668_v52 = vmul.f32 -1.442695, %v338_v50 }
 0x9a5   :  { %723 = vpow2.f32 %v668_v52 }
 0x9a9   :  { %v722_v51 = vpop.eup %721 }
 0x9aa   :  { %361 = vrot.lane.b32.xlu2 %v722_v51, %s809_s26 }
 0x9ab   :  { %v724_v53 = vpop.eup %723 }
 0x9ac   :  { %v342_v54 = vadd.f32 1.0, %v724_v53 }
 0x9ae   :  { %725 = vrcp.f32 %v342_v54  ;;  %v354_v60 = vand.u32 2147483648, %v342_v54  ;;  %vm348_vm5 = vweird.f32 %v342_v54  ;;  %v352_v61 = vand.u32 2147483647, %v342_v54 }
 0x9b0   :  { %v355_v63 = vor.u32 1.1754944e-38, %v354_v60  ;;  %vm353_vm7 = vcmp.eq.f32.partialorder %v352_v61, 8.507059e+37 }
 0x9b4   :  { %v726_v55 = vpop.eup %725 }
 0x9b5   :  { %v344_v56 = vmul.f32 %v726_v55, %v342_v54  ;;  %vm349_vm4 = vweird.f32 %v726_v55 }
 0x9b6   :  { %vm350_vm6 = vmor %vm348_vm5, %vm349_vm4 }
 0x9b7   :  { %v345_v57 = vsub.f32 1.0, %v344_v56 }
 0x9b9   :  { %v346_v58 = vmul.f32 %v726_v55, %v345_v57 }
 0x9bb   :  { %v347_v59 = vadd.f32 %v726_v55, %v346_v58 }
 0x9bd   :  { %v351_v62 = vsel %vm350_vm6, %v726_v55, %v347_v59  ;;  %vm630_vm6 = vcmask 25600  }
 0x9be   :  { %v356_v1 = vsel %vm353_vm7, %v355_v63, %v351_v62  ;;  %v675_v62 = vld [vmem:[%s948_s0 + $0xe] sm:$0x3]  ;;  %s811_s0 = smov 96  }
 0x9bf   :  { %v359_v3 = vmul.f32 %v356_v1, %v304_v43 }
 0xa04   :  { %v362_v0 = vpop.permute.xlu2 %361 }
 0xa05   :  { %v364_v2 = vmul.f32 %v362_v0, %v356_v1 }
 0xa07   :  { %366 = vrot.lane.b32.xlu0 %v364_v2, %s810_s27 }
 0xa79   :  { %v367_v4 = vpop.permute.xlu0 %366 }
 0xa7a   :  { %v369_v5 = vadd.f32 %v367_v4, %v359_v3 }
 0xa7c   :  { %727 = vtanh.f32 %v369_v5 }
 0xa82   :  { %v728_v6 = vpop.eup %727 }
 0xa83   :  { %372 = vrot.lane.b32.xlu1 %v728_v6, %s809_s26 }
 0xaf5   :  { %v373_v7 = vpop.permute.xlu1 %372 }
 0xaf6   :  { %v375_v8 = vmul.f32 %v373_v7, %v356_v1 }
 0xaf8   :  { %379 = vrot.lane.b32.xlu2 %v375_v8, %s810_s27 }
 0xb52   :  { %v380_v9 = vpop.permute.xlu2 %379 }
 0xb53   :  { %587 = vst.msk [vmem:[#allocation7 + $0x8] sm:$0x3] %vm40_vm0, %v380_v9  ;;  %670 = vmatmul.msk.f32.vlgmr.msrb.gmra.mxu1 %vm50_vm1, %v380_v9 }
 0xbd0   :  { %v400_v11 = vpop.f32.mrf.mxu1 }
 0xbd1   :  { %v403_v12 = vadd.f32 %v669_v10, %v400_v11 }
 0xbd3   :  { %729 = vtanh.f32 %v403_v12  ;;  %v671_v14 = vmul.f32 -1.442695, %v403_v12 }
 0xbd5   :  { %731 = vpow2.f32 %v671_v14 }
 0xbd9   :  { %v730_v13 = vpop.eup %729 }
 0xbda   :  { %426 = vrot.lane.b32.xlu0 %v730_v13, %s809_s26 }
 0xbdb   :  { %v732_v15 = vpop.eup %731 }
 0xbdc   :  { %v407_v16 = vadd.f32 1.0, %v732_v15 }
 0xbde   :  { %733 = vrcp.f32 %v407_v16  ;;  %v419_v22 = vand.u32 2147483648, %v407_v16  ;;  %vm413_vm9 = vweird.f32 %v407_v16  ;;  %v417_v23 = vand.u32 2147483647, %v407_v16 }
 0xbe0   :  { %v420_v25 = vor.u32 1.1754944e-38, %v419_v22  ;;  %vm418_vm11 = vcmp.eq.f32.partialorder %v417_v23, 8.507059e+37  ;;  %v602_v22 = vld [vmem:[%s950_s2 + $0x10] sm:$0xff]  ;;  %v601_v23 = vld [vmem:[%s950_s2 + $0x8] sm:$0xff] }
 0xbe4   :  { %v734_v17 = vpop.eup %733 }
 0xbe5   :  { %v409_v18 = vmul.f32 %v734_v17, %v407_v16  ;;  %vm414_vm8 = vweird.f32 %v734_v17 }
 0xbe6   :  { %vm415_vm10 = vmor %vm413_vm9, %vm414_vm8 }
 0xbe7   :  { %v410_v19 = vsub.f32 1.0, %v409_v18 }
 0xbe9   :  { %v411_v20 = vmul.f32 %v734_v17, %v410_v19 }
 0xbeb   :  { %v412_v21 = vadd.f32 %v734_v17, %v411_v20 }
 0xbed   :  { %v416_v24 = vsel %vm415_vm10, %v734_v17, %v412_v21  ;;  %v603_v21 = vld [vmem:[%s950_s2 + $0x18] sm:$0xff] }
 0xbee   :  { %v421_v27 = vsel %vm418_vm11, %v420_v25, %v416_v24  ;;  %622 = vmatpush.msra.mxu0 %v603_v21  ;;  %v600_v24 = vld [vmem:[%s950_s2] sm:$0xff]  ;;  %s813_s2 = smov 2  }
 0xbef   :  { %v424_v29 = vmul.f32 %v421_v27, %v369_v5 }
 0xbf0   :  { %623 = vmatpush.msra.mxu0 %v602_v22 }
 0xbf2   :  { %624 = vmatpush.msra.mxu0 %v601_v23 }
 0xbf4   :  { %625 = vmatpush.msra.mxu0 %v600_v24 }
 0xc4c   :  { %v427_v26 = vpop.permute.xlu0 %426 }
 0xc4d   :  { %v429_v28 = vmul.f32 %v427_v26, %v421_v27 }
 0xc4f   :  { %431 = vrot.lane.b32.xlu1 %v429_v28, %s810_s27 }
 0xcc1   :  { %v432_v30 = vpop.permute.xlu1 %431 }
 0xcc2   :  { %v434_v31 = vadd.f32 %v432_v30, %v424_v29  ;;  %v688_v29 = vld [vmem:[%s951_s3] ss:$0 sm:$0xff] }
 0xcc4   :  { %735 = vtanh.f32 %v434_v31 }
 0xcca   :  { %v736_v32 = vpop.eup %735 }
 0xccb   :  { %437 = vrot.lane.b32.xlu2 %v736_v32, %s809_s26 }
 0xd25   :  { %v438_v33 = vpop.permute.xlu2 %437 }
 0xd26   :  { %v440_v34 = vmul.f32 %v438_v33, %v421_v27 }
 0xd28   :  { %444 = vrot.lane.b32.xlu0 %v440_v34, %s810_s27 }
 0xd9a   :  { %v445_v35 = vpop.permute.xlu0 %444 }
 0xd9b   :  { %588 = vst.msk [vmem:[#allocation7 + $0xa] sm:$0x3] %vm40_vm0, %v445_v35  ;;  %673 = vmatmul.msk.f32.vlgmr.msrb.gmra.mxu2 %vm50_vm1, %v445_v35 }
 0xe1e   :  { %v465_v37 = vpop.f32.mrf.mxu2 }
 0xe1f   :  { %v468_v38 = vadd.f32 %v672_v36, %v465_v37 }
 0xe21   :  { %737 = vtanh.f32 %v468_v38  ;;  %v674_v40 = vmul.f32 -1.442695, %v468_v38 }
 0xe23   :  { %739 = vpow2.f32 %v674_v40 }
 0xe27   :  { %v738_v39 = vpop.eup %737 }
 0xe28   :  { %491 = vrot.lane.b32.xlu1 %v738_v39, %s809_s26 }
 0xe29   :  { %v740_v41 = vpop.eup %739 }
 0xe2a   :  { %v472_v42 = vadd.f32 1.0, %v740_v41 }
 0xe2c   :  { %741 = vrcp.f32 %v472_v42  ;;  %v484_v48 = vand.u32 2147483648, %v472_v42  ;;  %vm478_vm13 = vweird.f32 %v472_v42  ;;  %v482_v49 = vand.u32 2147483647, %v472_v42 }
 0xe2e   :  { %v485_v51 = vor.u32 1.1754944e-38, %v484_v48  ;;  %vm483_vm15 = vcmp.eq.f32.partialorder %v482_v49, 8.507059e+37 }
 0xe32   :  { %v742_v43 = vpop.eup %741 }
 0xe33   :  { %v474_v44 = vmul.f32 %v742_v43, %v472_v42  ;;  %vm479_vm12 = vweird.f32 %v742_v43 }
 0xe34   :  { %vm480_vm14 = vmor %vm478_vm13, %vm479_vm12 }
 0xe35   :  { %v475_v45 = vsub.f32 1.0, %v474_v44 }
 0xe37   :  { %v476_v46 = vmul.f32 %v742_v43, %v475_v45 }
 0xe39   :  { %v477_v47 = vadd.f32 %v742_v43, %v476_v46 }
 0xe3b   :  { %v481_v50 = vsel %vm480_vm14, %v742_v43, %v477_v47 }
 0xe3c   :  { %v486_v53 = vsel %vm483_vm15, %v485_v51, %v481_v50 }
 0xe3d   :  { %v489_v55 = vmul.f32 %v486_v53, %v434_v31 }
 0xe9a   :  { %v492_v52 = vpop.permute.xlu1 %491 }
 0xe9b   :  { %v494_v54 = vmul.f32 %v492_v52, %v486_v53 }
 0xe9d   :  { %496 = vrot.lane.b32.xlu2 %v494_v54, %s810_s27 }
 0xef7   :  { %v497_v56 = vpop.permute.xlu2 %496 }
 0xef8   :  { %v499_v57 = vadd.f32 %v497_v56, %v489_v55 }
 0xefa   :  { %743 = vtanh.f32 %v499_v57 }
 0xf00   :  { %v744_v58 = vpop.eup %743 }
 0xf01   :  { %502 = vrot.lane.b32.xlu0 %v744_v58, %s809_s26 }
 0xf73   :  { %v503_v59 = vpop.permute.xlu0 %502 }
 0xf74   :  { %v505_v60 = vmul.f32 %v503_v59, %v486_v53 }
 0xf76   :  { %509 = vrot.lane.b32.xlu1 %v505_v60, %s810_s27 }
 0xfe8   :  { %v510_v61 = vpop.permute.xlu1 %509 }
 0xfe9   :  { %589 = vst.msk [vmem:[#allocation7 + $0xc] sm:$0x3] %vm40_vm0, %v510_v61  ;;  %676 = vmatmul.msk.f32.vlgmr.msrb.gmra.mxu3 %vm50_vm1, %v510_v61 }
0x106c   :  { %v530_v63 = vpop.f32.mrf.mxu3 }
0x106d   :  { %v533_v0 = vadd.f32 %v675_v62, %v530_v63 }
0x106f   :  { %745 = vtanh.f32 %v533_v0  ;;  %v677_v2 = vmul.f32 -1.442695, %v533_v0 }
0x1071   :  { %747 = vpow2.f32 %v677_v2 }
0x1075   :  { %v746_v1 = vpop.eup %745 }
0x1076   :  { %556 = vrot.lane.b32.xlu2 %v746_v1, %s809_s26 }
0x1077   :  { %v748_v3 = vpop.eup %747 }
0x1078   :  { %v537_v4 = vadd.f32 1.0, %v748_v3 }
0x107a   :  { %749 = vrcp.f32 %v537_v4  ;;  %v549_v10 = vand.u32 2147483648, %v537_v4  ;;  %vm543_vm3 = vweird.f32 %v537_v4  ;;  %v547_v11 = vand.u32 2147483647, %v537_v4 }
0x107c   :  { %v550_v13 = vor.u32 1.1754944e-38, %v549_v10  ;;  %vm548_vm5 = vcmp.eq.f32.partialorder %v547_v11, 8.507059e+37 }
0x1080   :  { %v750_v5 = vpop.eup %749 }
0x1081   :  { %v539_v6 = vmul.f32 %v750_v5, %v537_v4  ;;  %vm544_vm2 = vweird.f32 %v750_v5 }
0x1082   :  { %vm545_vm4 = vmor %vm543_vm3, %vm544_vm2 }
0x1083   :  { %v540_v7 = vsub.f32 1.0, %v539_v6 }
0x1085   :  { %v541_v8 = vmul.f32 %v750_v5, %v540_v7 }
0x1087   :  { %v542_v9 = vadd.f32 %v750_v5, %v541_v8 }
0x1089   :  { %v546_v12 = vsel %vm545_vm4, %v750_v5, %v542_v9 }
0x108a   :  { %v551_v15 = vsel %vm548_vm5, %v550_v13, %v546_v12 }
0x108b   :  { %v554_v17 = vmul.f32 %v551_v15, %v499_v57 }
0x10d0   :  { %v557_v14 = vpop.permute.xlu2 %556 }
0x10d1   :  { %v559_v16 = vmul.f32 %v557_v14, %v551_v15 }
0x10d3   :  { %561 = vrot.lane.b32.xlu0 %v559_v16, %s810_s27 }
0x1145   :  { %v562_v18 = vpop.permute.xlu0 %561 }
0x1146   :  { %v564_v19 = vadd.f32 %v562_v18, %v554_v17 }
0x1148   :  { %751 = vtanh.f32 %v564_v19  ;;  %593 = vrot.lane.b32.xlu0 %v564_v19, %s811_s0 }
0x114e   :  { %v752_v20 = vpop.eup %751 }
0x114f   :  { %567 = vrot.lane.b32.xlu1 %v752_v20, %s809_s26 }
0x11ba   :  { %v594_v25 = vpop.permute.xlu0 %593 }
0x11bb   :  { %596 = vst.msk [vmem:[#allocation3] sm:$0x3] %vm40_vm0, %v594_v25 }
0x11c1   :  { %v568_v26 = vpop.permute.xlu1 %567 }
0x11c2   :  { %v570_v27 = vmul.f32 %v568_v26, %v551_v15 }
0x11c4   :  { %572 = vrot.lane.b32.xlu2 %v570_v27, %s810_s27 }
0x121e   :  { %v573_v28 = vpop.permute.xlu2 %572 }
0x121f   :  { %590 = vst.msk [vmem:[#allocation7 + $0xe] sm:$0x3] %vm40_vm0, %v573_v28  ;;  %678 = vmatmul.msk.f32.vlgmr.msra.gmra.mxu0 %vm50_vm1, %v573_v28 }
0x1220   :  { %591 = vst.msk [vmem:[#allocation2] sm:$0x3] %vm40_vm0, %v573_v28  ;;  %644 = dma.vmem_to_hbm [thread:$0]  %s637_s25, 256, %s639_s29, [#allocation6], %s810_s27, %s810_s27, %s813_s2  }
0x129c   :  { %v627_v30 = vpop.f32.mrf.mxu0 }
0x129d   :  { %v628_v31 = vadd.f32 %v688_v29, %v627_v30 }
0x129f   :  { %631 = vst.msk [vmem:[%s953_s5] sm:$0x3] %vm630_vm6, %v628_v31 }
0x12a0   :  { %803 = dma.done.wait [#allocation6], 256  }
0x12a1   :  { %804 = vsyncadd [#allocation6], 4294967040 }
0x12a2   :  { %653 = vsyncpa [#allocation5], 1 }
0x12a3   :  { %654 = vsyncpa [#allocation6], 1 }

// kernel: single_lstm_forward.5
= control target key start
LH: loop header
LB: loop body
LE: loop exit
PB: predicated region body
PF: predicated region fallthrough
CT: control target
= control target key end

     0   :  { %vm23_vm0 = vcmask 254976   ;;  %v716_v2 = vmov 0.0   ;;  %vm33_vm1 = vcmask 261120   ;;  %s717_s27 = smov 64   ;;  %s718_s28 = smov 32   ;;  %s882_s1 = inlined_call_operand.vmem [shape: f32[32,128], index: 1, kind: input, shape index: {}]   ;;  %s883_s0 = inlined_call_operand.vmem [shape: f32[8,2,128], index: 0, kind: input, shape index: {}]   ;;  %s884_s4 = inlined_call_operand.vmem [shape: f32[8,2,32], index: 4, kind: output, shape index: {0}]   ;;  %s885_s3 = inlined_call_operand.vmem [shape: f32[1,4], index: 3, kind: input, shape index: {}]   ;;  %s886_s2 = inlined_call_operand.vmem [shape: f32[32,4], index: 2, kind: input, shape index: {}]   ;;  %s887_s5 = inlined_call_operand.vmem [shape: f32[2,4], index: 5, kind: output, shape index: {1}]  }
   0x1   :  { %v31_v0 = vld [vmem:[%s882_s1 + $0x18] sm:$0xff]  ;;  %v30_v1 = vld [vmem:[%s882_s1 + $0x10] sm:$0xff]  ;;  %24 = vst.msk [vmem:[#allocation2] sm:$0x3] %vm23_vm0, %v716_v2  ;;  %v29_v3 = vld [vmem:[%s882_s1 + $0x8] sm:$0xff] }
   0x2   :  { %49 = vmatpush.msra.mxu0 %v31_v0  ;;  %25 = vst.msk [vmem:[#allocation3] sm:$0x3] %vm23_vm0, %v716_v2  ;;  %118 = vmatpush.msra.mxu1 %v31_v0  ;;  %v28_v4 = vld [vmem:[%s882_s1] sm:$0xff] }
   0x3   :  { %183 = vmatpush.msra.mxu2 %v31_v0  ;;  %248 = vmatpush.msra.mxu3 %v31_v0  ;;  %v32_v6 = vld [vmem:[%s883_s0] sm:$0x3]  ;;  %v625_v34 = vld [vmem:[%s883_s0 + $0x2] sm:$0x3]  ;;  %v628_v60 = vld [vmem:[%s883_s0 + $0x4] sm:$0x3] }
   0x4   :  { %50 = vmatpush.msra.mxu0 %v30_v1  ;;  %119 = vmatpush.msra.mxu1 %v30_v1 }
   0x5   :  { %184 = vmatpush.msra.mxu2 %v30_v1  ;;  %249 = vmatpush.msra.mxu3 %v30_v1 }
   0x6   :  { %51 = vmatpush.msra.mxu0 %v29_v3  ;;  %120 = vmatpush.msra.mxu1 %v29_v3 }
   0x7   :  { %185 = vmatpush.msra.mxu2 %v29_v3  ;;  %250 = vmatpush.msra.mxu3 %v29_v3 }
   0x8   :  { %52 = vmatpush.msra.mxu0 %v28_v4  ;;  %v26_v5 = vld [vmem:[#allocation2] sm:$0x3]  ;;  %121 = vmatpush.msra.mxu1 %v28_v4 }
   0x9   :  { %623 = vmatmul.msk.f32.vlgmr.msra.gmra.mxu0 %vm33_vm1, %v26_v5  ;;  %186 = vmatpush.msra.mxu2 %v28_v4  ;;  %v27_v10 = vld [vmem:[#allocation3] sm:$0x3] }
   0xa   :  { %251 = vmatpush.msra.mxu3 %v28_v4  ;;  %313 = vmatpush.msrb.mxu0 %v31_v0 }
   0xb   :  { %378 = vmatpush.msrb.mxu1 %v31_v0  ;;  %443 = vmatpush.msrb.mxu2 %v31_v0 }
   0xc   :  { %314 = vmatpush.msrb.mxu0 %v30_v1  ;;  %508 = vmatpush.msrb.mxu3 %v31_v0 }
   0xd   :  { %379 = vmatpush.msrb.mxu1 %v30_v1  ;;  %444 = vmatpush.msrb.mxu2 %v30_v1 }
   0xe   :  { %315 = vmatpush.msrb.mxu0 %v29_v3  ;;  %509 = vmatpush.msrb.mxu3 %v30_v1 }
   0xf   :  { %380 = vmatpush.msrb.mxu1 %v29_v3  ;;  %445 = vmatpush.msrb.mxu2 %v29_v3 }
  0x10   :  { %316 = vmatpush.msrb.mxu0 %v28_v4  ;;  %510 = vmatpush.msrb.mxu3 %v29_v3 }
  0x11   :  { %381 = vmatpush.msrb.mxu1 %v28_v4  ;;  %446 = vmatpush.msrb.mxu2 %v28_v4 }
  0x12   :  { %511 = vmatpush.msrb.mxu3 %v28_v4 }
  0x86   :  { %v54_v7 = vpop.f32.mrf.mxu0 }
  0x87   :  { %v57_v8 = vadd.f32 %v54_v7, %v32_v6 }
  0x89   :  { %652 = vtanh.f32 %v57_v8  ;;  %v624_v11 = vmul.f32 -1.442695, %v57_v8 }
  0x8b   :  { %654 = vpow2.f32 %v624_v11 }
  0x8f   :  { %v653_v9 = vpop.eup %652 }
  0x90   :  { %84 = vrot.lane.b32.xlu0 %v653_v9, %s717_s27 }
  0x91   :  { %v655_v12 = vpop.eup %654 }
  0x92   :  { %v61_v13 = vadd.f32 1.0, %v655_v12 }
  0x94   :  { %656 = vrcp.f32 %v61_v13  ;;  %v73_v19 = vand.u32 2147483648, %v61_v13  ;;  %vm67_vm3 = vweird.f32 %v61_v13  ;;  %v71_v20 = vand.u32 2147483647, %v61_v13 }
  0x96   :  { %v74_v22 = vor.u32 1.1754944e-38, %v73_v19  ;;  %vm72_vm5 = vcmp.eq.f32.partialorder %v71_v20, 8.507059e+37 }
  0x98   :  { %79 = vrot.lane.b32.xlu0 %v27_v10, %s718_s28 }
  0x9a   :  { %v657_v14 = vpop.eup %656 }
  0x9b   :  { %v63_v15 = vmul.f32 %v657_v14, %v61_v13  ;;  %vm68_vm2 = vweird.f32 %v657_v14 }
  0x9c   :  { %vm69_vm4 = vmor %vm67_vm3, %vm68_vm2 }
  0x9d   :  { %v64_v16 = vsub.f32 1.0, %v63_v15 }
  0x9f   :  { %v65_v17 = vmul.f32 %v657_v14, %v64_v16 }
  0xa1   :  { %v66_v18 = vadd.f32 %v657_v14, %v65_v17 }
  0xa3   :  { %v70_v21 = vsel %vm69_vm4, %v657_v14, %v66_v18 }
  0xa4   :  { %v75_v24 = vsel %vm72_vm5, %v74_v22, %v70_v21  ;;  %v631_v22 = vld [vmem:[%s883_s0 + $0x6] sm:$0x3] }
 0x102   :  { %v85_v23 = vpop.permute.xlu0 %84 }
 0x103   :  { %v87_v25 = vmul.f32 %v85_v23, %v75_v24 }
 0x105   :  { %89 = vrot.lane.b32.xlu1 %v87_v25, %s718_s28 }
 0x10a   :  { %v80_v26 = vpop.permute.xlu0 %79 }
 0x10b   :  { %v82_v27 = vmul.f32 %v80_v26, %v75_v24 }
 0x177   :  { %v90_v28 = vpop.permute.xlu1 %89 }
 0x178   :  { %v92_v29 = vadd.f32 %v90_v28, %v82_v27 }
 0x17a   :  { %658 = vtanh.f32 %v92_v29 }
 0x180   :  { %v659_v30 = vpop.eup %658 }
 0x181   :  { %95 = vrot.lane.b32.xlu1 %v659_v30, %s717_s27 }
 0x1f3   :  { %v96_v31 = vpop.permute.xlu1 %95 }
 0x1f4   :  { %v98_v32 = vmul.f32 %v96_v31, %v75_v24 }
 0x1f6   :  { %102 = vrot.lane.b32.xlu2 %v98_v32, %s718_s28 }
 0x250   :  { %v103_v33 = vpop.permute.xlu2 %102 }
 0x251   :  { %566 = vst.msk [vmem:[%s884_s4] sm:$0x3] %vm23_vm0, %v103_v33  ;;  %626 = vmatmul.msk.f32.vlgmr.msra.gmra.mxu1 %vm33_vm1, %v103_v33 }
 0x2ce   :  { %v123_v35 = vpop.f32.mrf.mxu1 }
 0x2cf   :  { %v126_v36 = vadd.f32 %v625_v34, %v123_v35 }
 0x2d1   :  { %660 = vtanh.f32 %v126_v36  ;;  %v627_v38 = vmul.f32 -1.442695, %v126_v36 }
 0x2d3   :  { %662 = vpow2.f32 %v627_v38 }
 0x2d7   :  { %v661_v37 = vpop.eup %660 }
 0x2d8   :  { %149 = vrot.lane.b32.xlu2 %v661_v37, %s717_s27 }
 0x2d9   :  { %v663_v39 = vpop.eup %662 }
 0x2da   :  { %v130_v40 = vadd.f32 1.0, %v663_v39 }
 0x2dc   :  { %664 = vrcp.f32 %v130_v40  ;;  %v142_v46 = vand.u32 2147483648, %v130_v40  ;;  %vm136_vm7 = vweird.f32 %v130_v40  ;;  %v140_v47 = vand.u32 2147483647, %v130_v40 }
 0x2de   :  { %v143_v49 = vor.u32 1.1754944e-38, %v142_v46  ;;  %vm141_vm9 = vcmp.eq.f32.partialorder %v140_v47, 8.507059e+37 }
 0x2e2   :  { %v665_v41 = vpop.eup %664 }
 0x2e3   :  { %v132_v42 = vmul.f32 %v665_v41, %v130_v40  ;;  %vm137_vm6 = vweird.f32 %v665_v41 }
 0x2e4   :  { %vm138_vm8 = vmor %vm136_vm7, %vm137_vm6 }
 0x2e5   :  { %v133_v43 = vsub.f32 1.0, %v132_v42 }
 0x2e7   :  { %v134_v44 = vmul.f32 %v665_v41, %v133_v43 }
 0x2e9   :  { %v135_v45 = vadd.f32 %v665_v41, %v134_v44 }
 0x2eb   :  { %v139_v48 = vsel %vm138_vm8, %v665_v41, %v135_v45 }
 0x2ec   :  { %v144_v51 = vsel %vm141_vm9, %v143_v49, %v139_v48  ;;  %v634_v48 = vld [vmem:[%s883_s0 + $0x8] sm:$0x3] }
 0x2ed   :  { %v147_v53 = vmul.f32 %v144_v51, %v92_v29 }
 0x332   :  { %v150_v50 = vpop.permute.xlu2 %149 }
 0x333   :  { %v152_v52 = vmul.f32 %v150_v50, %v144_v51 }
 0x335   :  { %154 = vrot.lane.b32.xlu0 %v152_v52, %s718_s28 }
 0x3a7   :  { %v155_v54 = vpop.permute.xlu0 %154 }
 0x3a8   :  { %v157_v55 = vadd.f32 %v155_v54, %v147_v53 }
 0x3aa   :  { %666 = vtanh.f32 %v157_v55 }
 0x3b0   :  { %v667_v56 = vpop.eup %666 }
 0x3b1   :  { %160 = vrot.lane.b32.xlu1 %v667_v56, %s717_s27 }
 0x423   :  { %v161_v57 = vpop.permute.xlu1 %160 }
 0x424   :  { %v163_v58 = vmul.f32 %v161_v57, %v144_v51 }
 0x426   :  { %167 = vrot.lane.b32.xlu2 %v163_v58, %s718_s28 }
 0x480   :  { %v168_v59 = vpop.permute.xlu2 %167 }
 0x481   :  { %567 = vst.msk [vmem:[%s884_s4 + $0x2] sm:$0x3] %vm23_vm0, %v168_v59  ;;  %629 = vmatmul.msk.f32.vlgmr.msra.gmra.mxu2 %vm33_vm1, %v168_v59 }
 0x504   :  { %v188_v61 = vpop.f32.mrf.mxu2 }
 0x505   :  { %v191_v62 = vadd.f32 %v628_v60, %v188_v61 }
 0x507   :  { %668 = vtanh.f32 %v191_v62  ;;  %v630_v0 = vmul.f32 -1.442695, %v191_v62 }
 0x509   :  { %670 = vpow2.f32 %v630_v0 }
 0x50d   :  { %v669_v63 = vpop.eup %668 }
 0x50e   :  { %214 = vrot.lane.b32.xlu0 %v669_v63, %s717_s27 }
 0x50f   :  { %v671_v1 = vpop.eup %670 }
 0x510   :  { %v195_v2 = vadd.f32 1.0, %v671_v1 }
 0x512   :  { %672 = vrcp.f32 %v195_v2  ;;  %v207_v8 = vand.u32 2147483648, %v195_v2  ;;  %vm201_vm11 = vweird.f32 %v195_v2  ;;  %v205_v9 = vand.u32 2147483647, %v195_v2 }
 0x514   :  { %v208_v11 = vor.u32 1.1754944e-38, %v207_v8  ;;  %vm206_vm13 = vcmp.eq.f32.partialorder %v205_v9, 8.507059e+37 }
 0x518   :  { %v673_v3 = vpop.eup %672 }
 0x519   :  { %v197_v4 = vmul.f32 %v673_v3, %v195_v2  ;;  %vm202_vm10 = vweird.f32 %v673_v3 }
 0x51a   :  { %vm203_vm12 = vmor %vm201_vm11, %vm202_vm10 }
 0x51b   :  { %v198_v5 = vsub.f32 1.0, %v197_v4 }
 0x51d   :  { %v199_v6 = vmul.f32 %v673_v3, %v198_v5 }
 0x51f   :  { %v200_v7 = vadd.f32 %v673_v3, %v199_v6 }
 0x521   :  { %v204_v10 = vsel %vm203_vm12, %v673_v3, %v200_v7 }
 0x522   :  { %v209_v13 = vsel %vm206_vm13, %v208_v11, %v204_v10  ;;  %v637_v10 = vld [vmem:[%s883_s0 + $0xa] sm:$0x3] }
 0x523   :  { %v212_v15 = vmul.f32 %v209_v13, %v157_v55 }
 0x580   :  { %v215_v12 = vpop.permute.xlu0 %214 }
 0x581   :  { %v217_v14 = vmul.f32 %v215_v12, %v209_v13 }
 0x583   :  { %219 = vrot.lane.b32.xlu1 %v217_v14, %s718_s28 }
 0x5f5   :  { %v220_v16 = vpop.permute.xlu1 %219 }
 0x5f6   :  { %v222_v17 = vadd.f32 %v220_v16, %v212_v15 }
 0x5f8   :  { %674 = vtanh.f32 %v222_v17 }
 0x5fe   :  { %v675_v18 = vpop.eup %674 }
 0x5ff   :  { %225 = vrot.lane.b32.xlu2 %v675_v18, %s717_s27 }
 0x659   :  { %v226_v19 = vpop.permute.xlu2 %225 }
 0x65a   :  { %v228_v20 = vmul.f32 %v226_v19, %v209_v13 }
 0x65c   :  { %232 = vrot.lane.b32.xlu0 %v228_v20, %s718_s28 }
 0x6ce   :  { %v233_v21 = vpop.permute.xlu0 %232 }
 0x6cf   :  { %568 = vst.msk [vmem:[%s884_s4 + $0x4] sm:$0x3] %vm23_vm0, %v233_v21  ;;  %632 = vmatmul.msk.f32.vlgmr.msra.gmra.mxu3 %vm33_vm1, %v233_v21 }
 0x752   :  { %v253_v23 = vpop.f32.mrf.mxu3 }
 0x753   :  { %v256_v24 = vadd.f32 %v631_v22, %v253_v23 }
 0x755   :  { %676 = vtanh.f32 %v256_v24  ;;  %v633_v26 = vmul.f32 -1.442695, %v256_v24 }
 0x757   :  { %678 = vpow2.f32 %v633_v26 }
 0x75b   :  { %v677_v25 = vpop.eup %676 }
 0x75c   :  { %279 = vrot.lane.b32.xlu1 %v677_v25, %s717_s27 }
 0x75d   :  { %v679_v27 = vpop.eup %678 }
 0x75e   :  { %v260_v28 = vadd.f32 1.0, %v679_v27 }
 0x760   :  { %680 = vrcp.f32 %v260_v28  ;;  %v272_v34 = vand.u32 2147483648, %v260_v28  ;;  %vm266_vm15 = vweird.f32 %v260_v28  ;;  %v270_v35 = vand.u32 2147483647, %v260_v28 }
 0x762   :  { %v273_v37 = vor.u32 1.1754944e-38, %v272_v34  ;;  %vm271_vm3 = vcmp.eq.f32.partialorder %v270_v35, 8.507059e+37 }
 0x766   :  { %v681_v29 = vpop.eup %680 }
 0x767   :  { %v262_v30 = vmul.f32 %v681_v29, %v260_v28  ;;  %vm267_vm14 = vweird.f32 %v681_v29 }
 0x768   :  { %vm268_vm2 = vmor %vm266_vm15, %vm267_vm14 }
 0x769   :  { %v263_v31 = vsub.f32 1.0, %v262_v30 }
 0x76b   :  { %v264_v32 = vmul.f32 %v681_v29, %v263_v31 }
 0x76d   :  { %v265_v33 = vadd.f32 %v681_v29, %v264_v32 }
 0x76f   :  { %v269_v36 = vsel %vm268_vm2, %v681_v29, %v265_v33 }
 0x770   :  { %v274_v39 = vsel %vm271_vm3, %v273_v37, %v269_v36  ;;  %v640_v36 = vld [vmem:[%s883_s0 + $0xc] sm:$0x3] }
 0x771   :  { %v277_v41 = vmul.f32 %v274_v39, %v222_v17 }
 0x7ce   :  { %v280_v38 = vpop.permute.xlu1 %279 }
 0x7cf   :  { %v282_v40 = vmul.f32 %v280_v38, %v274_v39 }
 0x7d1   :  { %284 = vrot.lane.b32.xlu2 %v282_v40, %s718_s28 }
 0x82b   :  { %v285_v42 = vpop.permute.xlu2 %284 }
 0x82c   :  { %v287_v43 = vadd.f32 %v285_v42, %v277_v41 }
 0x82e   :  { %682 = vtanh.f32 %v287_v43 }
 0x834   :  { %v683_v44 = vpop.eup %682 }
 0x835   :  { %290 = vrot.lane.b32.xlu0 %v683_v44, %s717_s27 }
 0x8a7   :  { %v291_v45 = vpop.permute.xlu0 %290 }
 0x8a8   :  { %v293_v46 = vmul.f32 %v291_v45, %v274_v39 }
 0x8aa   :  { %297 = vrot.lane.b32.xlu1 %v293_v46, %s718_s28 }
 0x91c   :  { %v298_v47 = vpop.permute.xlu1 %297 }
 0x91d   :  { %569 = vst.msk [vmem:[%s884_s4 + $0x6] sm:$0x3] %vm23_vm0, %v298_v47  ;;  %635 = vmatmul.msk.f32.vlgmr.msrb.gmra.mxu0 %vm33_vm1, %v298_v47 }
 0x99a   :  { %v318_v49 = vpop.f32.mrf.mxu0 }
 0x99b   :  { %v321_v50 = vadd.f32 %v634_v48, %v318_v49 }
 0x99d   :  { %684 = vtanh.f32 %v321_v50  ;;  %v636_v52 = vmul.f32 -1.442695, %v321_v50 }
 0x99f   :  { %686 = vpow2.f32 %v636_v52 }
 0x9a3   :  { %v685_v51 = vpop.eup %684 }
 0x9a4   :  { %344 = vrot.lane.b32.xlu2 %v685_v51, %s717_s27 }
 0x9a5   :  { %v687_v53 = vpop.eup %686 }
 0x9a6   :  { %v325_v54 = vadd.f32 1.0, %v687_v53 }
 0x9a8   :  { %688 = vrcp.f32 %v325_v54  ;;  %v337_v60 = vand.u32 2147483648, %v325_v54  ;;  %vm331_vm5 = vweird.f32 %v325_v54  ;;  %v335_v61 = vand.u32 2147483647, %v325_v54 }
 0x9aa   :  { %v338_v63 = vor.u32 1.1754944e-38, %v337_v60  ;;  %vm336_vm7 = vcmp.eq.f32.partialorder %v335_v61, 8.507059e+37 }
 0x9ae   :  { %v689_v55 = vpop.eup %688 }
 0x9af   :  { %v327_v56 = vmul.f32 %v689_v55, %v325_v54  ;;  %vm332_vm4 = vweird.f32 %v689_v55 }
 0x9b0   :  { %vm333_vm6 = vmor %vm331_vm5, %vm332_vm4 }
 0x9b1   :  { %v328_v57 = vsub.f32 1.0, %v327_v56 }
 0x9b3   :  { %v329_v58 = vmul.f32 %v689_v55, %v328_v57 }
 0x9b5   :  { %v330_v59 = vadd.f32 %v689_v55, %v329_v58 }
 0x9b7   :  { %v334_v62 = vsel %vm333_vm6, %v689_v55, %v330_v59  ;;  %vm613_vm6 = vcmask 25600  }
 0x9b8   :  { %v339_v1 = vsel %vm336_vm7, %v338_v63, %v334_v62  ;;  %v643_v62 = vld [vmem:[%s883_s0 + $0xe] sm:$0x3]  ;;  %s719_s0 = smov 96  }
 0x9b9   :  { %v342_v3 = vmul.f32 %v339_v1, %v287_v43 }
 0x9fe   :  { %v345_v0 = vpop.permute.xlu2 %344 }
 0x9ff   :  { %v347_v2 = vmul.f32 %v345_v0, %v339_v1 }
 0xa01   :  { %349 = vrot.lane.b32.xlu0 %v347_v2, %s718_s28 }
 0xa73   :  { %v350_v4 = vpop.permute.xlu0 %349 }
 0xa74   :  { %v352_v5 = vadd.f32 %v350_v4, %v342_v3 }
 0xa76   :  { %690 = vtanh.f32 %v352_v5 }
 0xa7c   :  { %v691_v6 = vpop.eup %690 }
 0xa7d   :  { %355 = vrot.lane.b32.xlu1 %v691_v6, %s717_s27 }
 0xaef   :  { %v356_v7 = vpop.permute.xlu1 %355 }
 0xaf0   :  { %v358_v8 = vmul.f32 %v356_v7, %v339_v1 }
 0xaf2   :  { %362 = vrot.lane.b32.xlu2 %v358_v8, %s718_s28 }
 0xb4c   :  { %v363_v9 = vpop.permute.xlu2 %362 }
 0xb4d   :  { %570 = vst.msk [vmem:[%s884_s4 + $0x8] sm:$0x3] %vm23_vm0, %v363_v9  ;;  %638 = vmatmul.msk.f32.vlgmr.msrb.gmra.mxu1 %vm33_vm1, %v363_v9 }
 0xbca   :  { %v383_v11 = vpop.f32.mrf.mxu1 }
 0xbcb   :  { %v386_v12 = vadd.f32 %v637_v10, %v383_v11 }
 0xbcd   :  { %692 = vtanh.f32 %v386_v12  ;;  %v639_v14 = vmul.f32 -1.442695, %v386_v12 }
 0xbcf   :  { %694 = vpow2.f32 %v639_v14 }
 0xbd3   :  { %v693_v13 = vpop.eup %692 }
 0xbd4   :  { %409 = vrot.lane.b32.xlu0 %v693_v13, %s717_s27 }
 0xbd5   :  { %v695_v15 = vpop.eup %694 }
 0xbd6   :  { %v390_v16 = vadd.f32 1.0, %v695_v15 }
 0xbd8   :  { %696 = vrcp.f32 %v390_v16  ;;  %v402_v22 = vand.u32 2147483648, %v390_v16  ;;  %vm396_vm9 = vweird.f32 %v390_v16  ;;  %v400_v23 = vand.u32 2147483647, %v390_v16 }
 0xbda   :  { %v403_v25 = vor.u32 1.1754944e-38, %v402_v22  ;;  %vm401_vm11 = vcmp.eq.f32.partialorder %v400_v23, 8.507059e+37  ;;  %v585_v22 = vld [vmem:[%s886_s2 + $0x10] sm:$0xff]  ;;  %v584_v23 = vld [vmem:[%s886_s2 + $0x8] sm:$0xff] }
 0xbde   :  { %v697_v17 = vpop.eup %696 }
 0xbdf   :  { %v392_v18 = vmul.f32 %v697_v17, %v390_v16  ;;  %vm397_vm8 = vweird.f32 %v697_v17 }
 0xbe0   :  { %vm398_vm10 = vmor %vm396_vm9, %vm397_vm8 }
 0xbe1   :  { %v393_v19 = vsub.f32 1.0, %v392_v18 }
 0xbe3   :  { %v394_v20 = vmul.f32 %v697_v17, %v393_v19 }
 0xbe5   :  { %v395_v21 = vadd.f32 %v697_v17, %v394_v20 }
 0xbe7   :  { %v399_v24 = vsel %vm398_vm10, %v697_v17, %v395_v21  ;;  %v586_v21 = vld [vmem:[%s886_s2 + $0x18] sm:$0xff] }
 0xbe8   :  { %v404_v27 = vsel %vm401_vm11, %v403_v25, %v399_v24  ;;  %605 = vmatpush.msra.mxu0 %v586_v21  ;;  %v583_v24 = vld [vmem:[%s886_s2] sm:$0xff] }
 0xbe9   :  { %v407_v29 = vmul.f32 %v404_v27, %v352_v5 }
 0xbea   :  { %606 = vmatpush.msra.mxu0 %v585_v22 }
 0xbec   :  { %607 = vmatpush.msra.mxu0 %v584_v23 }
 0xbee   :  { %608 = vmatpush.msra.mxu0 %v583_v24 }
 0xc46   :  { %v410_v26 = vpop.permute.xlu0 %409 }
 0xc47   :  { %v412_v28 = vmul.f32 %v410_v26, %v404_v27 }
 0xc49   :  { %414 = vrot.lane.b32.xlu1 %v412_v28, %s718_s28 }
 0xcbb   :  { %v415_v30 = vpop.permute.xlu1 %414 }
 0xcbc   :  { %v417_v31 = vadd.f32 %v415_v30, %v407_v29  ;;  %v651_v29 = vld [vmem:[%s885_s3] ss:$0 sm:$0xff] }
 0xcbe   :  { %698 = vtanh.f32 %v417_v31 }
 0xcc4   :  { %v699_v32 = vpop.eup %698 }
 0xcc5   :  { %420 = vrot.lane.b32.xlu2 %v699_v32, %s717_s27 }
 0xd1f   :  { %v421_v33 = vpop.permute.xlu2 %420 }
 0xd20   :  { %v423_v34 = vmul.f32 %v421_v33, %v404_v27 }
 0xd22   :  { %427 = vrot.lane.b32.xlu0 %v423_v34, %s718_s28 }
 0xd94   :  { %v428_v35 = vpop.permute.xlu0 %427 }
 0xd95   :  { %571 = vst.msk [vmem:[%s884_s4 + $0xa] sm:$0x3] %vm23_vm0, %v428_v35  ;;  %641 = vmatmul.msk.f32.vlgmr.msrb.gmra.mxu2 %vm33_vm1, %v428_v35 }
 0xe18   :  { %v448_v37 = vpop.f32.mrf.mxu2 }
 0xe19   :  { %v451_v38 = vadd.f32 %v640_v36, %v448_v37 }
 0xe1b   :  { %700 = vtanh.f32 %v451_v38  ;;  %v642_v40 = vmul.f32 -1.442695, %v451_v38 }
 0xe1d   :  { %702 = vpow2.f32 %v642_v40 }
 0xe21   :  { %v701_v39 = vpop.eup %700 }
 0xe22   :  { %474 = vrot.lane.b32.xlu1 %v701_v39, %s717_s27 }
 0xe23   :  { %v703_v41 = vpop.eup %702 }
 0xe24   :  { %v455_v42 = vadd.f32 1.0, %v703_v41 }
 0xe26   :  { %704 = vrcp.f32 %v455_v42  ;;  %v467_v48 = vand.u32 2147483648, %v455_v42  ;;  %vm461_vm13 = vweird.f32 %v455_v42  ;;  %v465_v49 = vand.u32 2147483647, %v455_v42 }
 0xe28   :  { %v468_v51 = vor.u32 1.1754944e-38, %v467_v48  ;;  %vm466_vm15 = vcmp.eq.f32.partialorder %v465_v49, 8.507059e+37 }
 0xe2c   :  { %v705_v43 = vpop.eup %704 }
 0xe2d   :  { %v457_v44 = vmul.f32 %v705_v43, %v455_v42  ;;  %vm462_vm12 = vweird.f32 %v705_v43 }
 0xe2e   :  { %vm463_vm14 = vmor %vm461_vm13, %vm462_vm12 }
 0xe2f   :  { %v458_v45 = vsub.f32 1.0, %v457_v44 }
 0xe31   :  { %v459_v46 = vmul.f32 %v705_v43, %v458_v45 }
 0xe33   :  { %v460_v47 = vadd.f32 %v705_v43, %v459_v46 }
 0xe35   :  { %v464_v50 = vsel %vm463_vm14, %v705_v43, %v460_v47 }
 0xe36   :  { %v469_v53 = vsel %vm466_vm15, %v468_v51, %v464_v50 }
 0xe37   :  { %v472_v55 = vmul.f32 %v469_v53, %v417_v31 }
 0xe94   :  { %v475_v52 = vpop.permute.xlu1 %474 }
 0xe95   :  { %v477_v54 = vmul.f32 %v475_v52, %v469_v53 }
 0xe97   :  { %479 = vrot.lane.b32.xlu2 %v477_v54, %s718_s28 }
 0xef1   :  { %v480_v56 = vpop.permute.xlu2 %479 }
 0xef2   :  { %v482_v57 = vadd.f32 %v480_v56, %v472_v55 }
 0xef4   :  { %706 = vtanh.f32 %v482_v57 }
 0xefa   :  { %v707_v58 = vpop.eup %706 }
 0xefb   :  { %485 = vrot.lane.b32.xlu0 %v707_v58, %s717_s27 }
 0xf6d   :  { %v486_v59 = vpop.permute.xlu0 %485 }
 0xf6e   :  { %v488_v60 = vmul.f32 %v486_v59, %v469_v53 }
 0xf70   :  { %492 = vrot.lane.b32.xlu1 %v488_v60, %s718_s28 }
 0xfe2   :  { %v493_v61 = vpop.permute.xlu1 %492 }
 0xfe3   :  { %572 = vst.msk [vmem:[%s884_s4 + $0xc] sm:$0x3] %vm23_vm0, %v493_v61  ;;  %644 = vmatmul.msk.f32.vlgmr.msrb.gmra.mxu3 %vm33_vm1, %v493_v61 }
0x1066   :  { %v513_v63 = vpop.f32.mrf.mxu3 }
0x1067   :  { %v516_v0 = vadd.f32 %v643_v62, %v513_v63 }
0x1069   :  { %708 = vtanh.f32 %v516_v0  ;;  %v645_v2 = vmul.f32 -1.442695, %v516_v0 }
0x106b   :  { %710 = vpow2.f32 %v645_v2 }
0x106f   :  { %v709_v1 = vpop.eup %708 }
0x1070   :  { %539 = vrot.lane.b32.xlu2 %v709_v1, %s717_s27 }
0x1071   :  { %v711_v3 = vpop.eup %710 }
0x1072   :  { %v520_v4 = vadd.f32 1.0, %v711_v3 }
0x1074   :  { %712 = vrcp.f32 %v520_v4  ;;  %v532_v10 = vand.u32 2147483648, %v520_v4  ;;  %vm526_vm3 = vweird.f32 %v520_v4  ;;  %v530_v11 = vand.u32 2147483647, %v520_v4 }
0x1076   :  { %v533_v13 = vor.u32 1.1754944e-38, %v532_v10  ;;  %vm531_vm5 = vcmp.eq.f32.partialorder %v530_v11, 8.507059e+37 }
0x107a   :  { %v713_v5 = vpop.eup %712 }
0x107b   :  { %v522_v6 = vmul.f32 %v713_v5, %v520_v4  ;;  %vm527_vm2 = vweird.f32 %v713_v5 }
0x107c   :  { %vm528_vm4 = vmor %vm526_vm3, %vm527_vm2 }
0x107d   :  { %v523_v7 = vsub.f32 1.0, %v522_v6 }
0x107f   :  { %v524_v8 = vmul.f32 %v713_v5, %v523_v7 }
0x1081   :  { %v525_v9 = vadd.f32 %v713_v5, %v524_v8 }
0x1083   :  { %v529_v12 = vsel %vm528_vm4, %v713_v5, %v525_v9 }
0x1084   :  { %v534_v15 = vsel %vm531_vm5, %v533_v13, %v529_v12 }
0x1085   :  { %v537_v17 = vmul.f32 %v534_v15, %v482_v57 }
0x10ca   :  { %v540_v14 = vpop.permute.xlu2 %539 }
0x10cb   :  { %v542_v16 = vmul.f32 %v540_v14, %v534_v15 }
0x10cd   :  { %544 = vrot.lane.b32.xlu0 %v542_v16, %s718_s28 }
0x113f   :  { %v545_v18 = vpop.permute.xlu0 %544 }
0x1140   :  { %v547_v19 = vadd.f32 %v545_v18, %v537_v17 }
0x1142   :  { %714 = vtanh.f32 %v547_v19  ;;  %576 = vrot.lane.b32.xlu0 %v547_v19, %s719_s0 }
0x1148   :  { %v715_v20 = vpop.eup %714 }
0x1149   :  { %550 = vrot.lane.b32.xlu1 %v715_v20, %s717_s27 }
0x11b4   :  { %v577_v25 = vpop.permute.xlu0 %576 }
0x11b5   :  { %579 = vst.msk [vmem:[#allocation3] sm:$0x3] %vm23_vm0, %v577_v25 }
0x11bb   :  { %v551_v26 = vpop.permute.xlu1 %550 }
0x11bc   :  { %v553_v27 = vmul.f32 %v551_v26, %v534_v15 }
0x11be   :  { %555 = vrot.lane.b32.xlu2 %v553_v27, %s718_s28 }
0x1218   :  { %v556_v28 = vpop.permute.xlu2 %555 }
0x1219   :  { %573 = vst.msk [vmem:[%s884_s4 + $0xe] sm:$0x3] %vm23_vm0, %v556_v28  ;;  %646 = vmatmul.msk.f32.vlgmr.msra.gmra.mxu0 %vm33_vm1, %v556_v28 }
0x121a   :  { %574 = vst.msk [vmem:[#allocation2] sm:$0x3] %vm23_vm0, %v556_v28 }
0x1296   :  { %v610_v30 = vpop.f32.mrf.mxu0 }
0x1297   :  { %v611_v31 = vadd.f32 %v651_v29, %v610_v30 }
0x1299   :  { %614 = vst.msk [vmem:[%s887_s5] sm:$0x3] %vm613_vm6, %v611_v31 }

</bundles_post_ra>
